<compile_context>
chip_gen: v6e
topology: v6e:2x2x1
jax: 0.10.0
libtpu: 0.0.40
codegen_flags: <defaults>
</compile_context>

<pallas_src>
import functools

import jax
import jax.numpy as jnp
import numpy as np
from jax.experimental import pallas as pl
from jax.experimental.pallas import tpu as pltpu

C_IN = 4           # image channels
C_TRANS = 8        # modal_trans hidden channels
C_HOMO = 16        # homo_estimator hidden channels
COMPUTE_DTYPE = jnp.bfloat16   # MXU inputs; accumulation stays float32


# ----------------------------------------------------------------------------
# In-kernel helpers (operate on VMEM-resident values / refs)
# ----------------------------------------------------------------------------
def _conv3x3_acc(x, w_ref, H, W):
    """Raw 3x3 same-padding conv accumulation in channels-first flattened layout.

    x:      [Cin, H*W] float32 value (spatial on the 128-lane axis -> lane dense).
    w_ref:  [9, Cout, Cin] ref (bf16); tap k corresponds to (di, dj) = (k//3-1, k%3-1).
    Returns [Cout, H*W] float32 (no bias / activation).
    """
    Cin, HW = x.shape
    Cout = w_ref.shape[1]
    # Pad the flattened spatial axis by (W+1) zeros on both sides so every (di, dj)
    # neighbour is a constant lane offset; vertical out-of-range taps land in the zero
    # pad, horizontal wrap-around is masked per-column below.
    zpad = jnp.zeros((Cin, W + 1), jnp.float32)
    xb = jnp.concatenate([zpad, x, zpad], axis=-1)              # [Cin, HW + 2W + 2]
    col = jax.lax.broadcasted_iota(jnp.int32, (1, HW), 1) % W
    mask_l = (col >= 1).astype(jnp.float32)                     # valid cols for dj = -1
    mask_r = (col <= W - 2).astype(jnp.float32)                 # valid cols for dj = +1

    acc = jnp.zeros((Cout, HW), jnp.float32)
    for k in range(9):
        di, dj = k // 3 - 1, k % 3 - 1
        start = (W + 1) + di * W + dj
        xs = xb[:, start:start + HW]                            # [Cin, HW]  (x shifted by (di,dj))
        if dj == -1:
            xs = xs * mask_l
        elif dj == 1:
            xs = xs * mask_r
        acc = acc + jnp.dot(w_ref[k], xs.astype(COMPUTE_DTYPE),
                            preferred_element_type=jnp.float32)  # [Cout, HW]
    return acc


def _gap_fc(f, wfc_ref, bfc_ref):
    """Global average pool over the lane (spatial) axis + linear head.

    f: [C, HW] float32;  wfc_ref: [8, C] f32;  bfc_ref: [8, 1] f32  ->  [8, 1] f32.
    (FC is applied before the reduction so the contraction runs on the MXU with N=HW lanes.)
    """
    hw = f.shape[1]
    g = jnp.dot(wfc_ref[...], f, preferred_element_type=jnp.float32)   # [8, HW]
    return jnp.sum(g, axis=1, keepdims=True) * (1.0 / hw) + bfc_ref[...]


# ----------------------------------------------------------------------------
# Kernel bodies (one grid step == one batch element)
# ----------------------------------------------------------------------------
def _modal_trans_kernel(x_ref, w1_ref, b1_ref, w2_ref, b2_ref, o_ref, *, H, W):
    x = x_ref[0]                                                        # [C_IN, HW] f32
    h = jnp.maximum(_conv3x3_acc(x, w1_ref, H, W) + b1_ref[...], 0.0)   # [C_TRANS, HW]
    y = _conv3x3_acc(h, w2_ref, H, W) + b2_ref[...]                     # [C_IN, HW]
    o_ref[0] = y.astype(o_ref.dtype)


def _homo_kernel(x1_ref, x2_ref, w1a_ref, w1b_ref, b1_ref, wfc_ref, bfc_ref,
                 o_ref, *, H, W):
    # conv over the channel-concatenated pair == conv(x1, Wa) + conv(x2, Wb)
    f = jnp.maximum(_conv3x3_acc(x1_ref[0], w1a_ref, H, W)
                    + _conv3x3_acc(x2_ref[0], w1b_ref, H, W)
                    + b1_ref[...], 0.0)                                 # [C_HOMO, HW]
    o_ref[0] = _gap_fc(f, wfc_ref, bfc_ref)                             # [8, 1]


def _sshnet_fused_kernel(x1_ref, x2_ref,
                         mtw1_ref, mtb1_ref, mtw2_ref, mtb2_ref,
                         hw1a_ref, hw1b_ref, hb1_ref, hwfc_ref, hbfc_ref,
                         pseudo_ref, pred_ref, *, H, W):
    """Whole SSHNet test/train12 forward for one batch element, intermediates in VMEM."""
    x1 = x1_ref[0]                                                      # [C_IN, HW]
    x2 = x2_ref[0]
    # modal_trans
    h = jnp.maximum(_conv3x3_acc(x1, mtw1_ref, H, W) + mtb1_ref[...], 0.0)
    pseudo = _conv3x3_acc(h, mtw2_ref, H, W) + mtb2_ref[...]
    pseudo_ref[0] = pseudo.astype(pseudo_ref.dtype)
    # homo_estimator (stop_gradient(pseudo) is the identity in the forward pass)
    f = jnp.maximum(_conv3x3_acc(pseudo, hw1a_ref, H, W)
                    + _conv3x3_acc(x2, hw1b_ref, H, W)
                    + hb1_ref[...], 0.0)
    pred_ref[0] = _gap_fc(f, hwfc_ref, hbfc_ref)


# ----------------------------------------------------------------------------
# pallas_call wrappers
# ----------------------------------------------------------------------------
def _bspec(shape):
    """Per-batch block: leading axis indexed by the grid, remaining dims full."""
    return pl.BlockSpec(shape, lambda b: (b,) + (0,) * (len(shape) - 1))


def _pspec(shape):
    """Whole-array (parameter) block, identical for every grid step."""
    return pl.BlockSpec(shape, lambda b: (0,) * len(shape))


_PARALLEL = pltpu.CompilerParams(dimension_semantics=("parallel",))


def modal_trans_apply(params, img_flat, H, W):
    """img_flat: [B, C_IN, H*W] f32 -> pseudo image [B, C_IN, H*W] f32."""
    B, _, HW = img_flat.shape
    kernel = functools.partial(_modal_trans_kernel, H=H, W=W)
    return pl.pallas_call(
        kernel,
        out_shape=jax.ShapeDtypeStruct((B, C_IN, HW), jnp.float32),
        grid=(B,),
        in_specs=[
            _bspec((1, C_IN, HW)),
            _pspec((9, C_TRANS, C_IN)),
            _pspec((C_TRANS, 1)),
            _pspec((9, C_IN, C_TRANS)),
            _pspec((C_IN, 1)),
        ],
        out_specs=_bspec((1, C_IN, HW)),
        compiler_params=_PARALLEL,
    )(img_flat,
      params["mt_w1"].astype(COMPUTE_DTYPE), params["mt_b1"],
      params["mt_w2"].astype(COMPUTE_DTYPE), params["mt_b2"])


def homo_estimator_apply(params, img1_flat, img2_flat, H, W):
    """img{1,2}_flat: [B, C_IN, H*W] f32 -> pred_h4p [B, 4, 2]."""
    B, _, HW = img1_flat.shape
    kernel = functools.partial(_homo_kernel, H=H, W=W)
    pred = pl.pallas_call(
        kernel,
        out_shape=jax.ShapeDtypeStruct((B, 8, 1), jnp.float32),
        grid=(B,),
        in_specs=[
            _bspec((1, C_IN, HW)),
            _bspec((1, C_IN, HW)),
            _pspec((9, C_HOMO, C_IN)),
            _pspec((9, C_HOMO, C_IN)),
            _pspec((C_HOMO, 1)),
            _pspec((8, C_HOMO)),
            _pspec((8, 1)),
        ],
        out_specs=_bspec((1, 8, 1)),
        compiler_params=_PARALLEL,
    )(img1_flat, img2_flat,
      params["he_w1a"].astype(COMPUTE_DTYPE), params["he_w1b"].astype(COMPUTE_DTYPE),
      params["he_b1"], params["he_wfc"], params["he_bfc"])
    return pred.reshape(B, 4, 2)


def sshnet_fused_apply(params, img1_flat, img2_flat, H, W):
    """Fully fused test/train12 path: one pallas_call -> (pseudo [B,C,HW], pred [B,4,2])."""
    B, _, HW = img1_flat.shape
    kernel = functools.partial(_sshnet_fused_kernel, H=H, W=W)
    pseudo, pred = pl.pallas_call(
        kernel,
        out_shape=(jax.ShapeDtypeStruct((B, C_IN, HW), jnp.float32),
                   jax.ShapeDtypeStruct((B, 8, 1), jnp.float32)),
        grid=(B,),
        in_specs=[
            _bspec((1, C_IN, HW)),
            _bspec((1, C_IN, HW)),
            _pspec((9, C_TRANS, C_IN)),
            _pspec((C_TRANS, 1)),
            _pspec((9, C_IN, C_TRANS)),
            _pspec((C_IN, 1)),
            _pspec((9, C_HOMO, C_IN)),
            _pspec((9, C_HOMO, C_IN)),
            _pspec((C_HOMO, 1)),
            _pspec((8, C_HOMO)),
            _pspec((8, 1)),
        ],
        out_specs=(_bspec((1, C_IN, HW)), _bspec((1, 8, 1))),
        compiler_params=_PARALLEL,
    )(img1_flat, img2_flat,
      params["mt_w1"].astype(COMPUTE_DTYPE), params["mt_b1"],
      params["mt_w2"].astype(COMPUTE_DTYPE), params["mt_b2"],
      params["he_w1a"].astype(COMPUTE_DTYPE), params["he_w1b"].astype(COMPUTE_DTYPE),
      params["he_b1"], params["he_wfc"], params["he_bfc"])
    return pseudo, pred.reshape(B, 4, 2)


# ----------------------------------------------------------------------------
# Model (deterministic synthetic parameters) and forward
# ----------------------------------------------------------------------------
def init_params(key):
    ks = jax.random.split(key, 9)
    g = lambda k, shape: 0.1 * jax.random.normal(k, shape, dtype=jnp.float32)
    return {
        # modal_trans (simplified TransformerUNet): conv3x3 -> ReLU -> conv3x3
        "mt_w1": g(ks[0], (9, C_TRANS, C_IN)),     # [tap, Cout, Cin], tap = 3*(di+1)+(dj+1)
        "mt_b1": g(ks[1], (C_TRANS, 1)),
        "mt_w2": g(ks[2], (9, C_IN, C_TRANS)),
        "mt_b2": g(ks[3], (C_IN, 1)),
        # homo_estimator (simplified IHN): conv3x3(img1 | img2) -> ReLU -> GAP -> fc(8)
        "he_w1a": g(ks[4], (9, C_HOMO, C_IN)),     # weights applied to img1 channels
        "he_w1b": g(ks[5], (9, C_HOMO, C_IN)),     # weights applied to img2 channels
        "he_b1": g(ks[6], (C_HOMO, 1)),
        "he_wfc": g(ks[7], (8, C_HOMO)),
        "he_bfc": g(ks[8], (8, 1)),
    }


def sshnet_forward(params, image1_nchw, image2_nchw, mode):
    B, C, H, W = image1_nchw.shape
    # NCHW -> channels-first flattened [B, C, H*W]: a pure reshape (no transpose / copy);
    # inside the kernels spatial (H*W) sits on the 128-wide lane axis (lane dense).
    img1 = image1_nchw.reshape(B, C, H * W)
    img2 = image2_nchw.reshape(B, C, H * W)
    if mode == "train11":
        p1w = modal_trans_apply(params, img1, H, W)
        p1 = modal_trans_apply(params, img2, H, W)
        return homo_estimator_apply(params, jax.lax.stop_gradient(p1w),
                                    jax.lax.stop_gradient(p1), H, W)
    elif mode == "train22":
        return homo_estimator_apply(params, img1, img2, H, W)
    elif mode in ("train12", "test"):
        # Fully fused single pallas_call: modal_trans + homo_estimator, VMEM-resident
        # intermediates. Returns pseudo image in NCHW (PyTorch convention) and pred_h4p.
        pseudo_flat, pred = sshnet_fused_apply(params, img1, img2, H, W)
        return pseudo_flat.reshape(B, C, H, W), pred
    else:
        print("ERROR : mode error")
        return None


# ----------------------------------------------------------------------------
# Pure-JAX (XLA) reference for the test path — correctness check only
# ----------------------------------------------------------------------------
def _reference_test_forward(params, image1, image2):
    def conv(x_nchw, w9):
        cout, cin = w9.shape[1], w9.shape[2]
        w = w9.reshape(3, 3, cout, cin).transpose(2, 3, 0, 1)      # OIHW
        return jax.lax.conv_general_dilated(
            x_nchw, w, window_strides=(1, 1), padding="SAME",
            dimension_numbers=("NCHW", "OIHW", "NCHW"))

    bias = lambda b: b.reshape(1, -1, 1, 1)
    h = jax.nn.relu(conv(image1, params["mt_w1"]) + bias(params["mt_b1"]))
    pseudo = conv(h, params["mt_w2"]) + bias(params["mt_b2"])
    f = jax.nn.relu(conv(pseudo, params["he_w1a"]) + conv(image2, params["he_w1b"])
                    + bias(params["he_b1"]))
    m = jnp.mean(f, axis=(2, 3))                                   # [B, C_HOMO]
    pred = m @ params["he_wfc"].T + params["he_bfc"].reshape(1, -1)
    return pseudo, pred.reshape(-1, 4, 2)


if __name__ == "__main__":
    key = jax.random.PRNGKey(0)
    kp, k1, k2 = jax.random.split(key, 3)
    params = init_params(kp)

    B, C, H, W = 2, C_IN, 16, 16
    image1 = jax.random.normal(k1, (B, C, H, W), dtype=jnp.float32)
    image2 = jax.random.normal(k2, (B, C, H, W), dtype=jnp.float32)

    fwd = jax.jit(sshnet_forward, static_argnames=("mode",))

    # Main (fully fused) test path.
    pseudo_img1, pred_h4p_12 = fwd(params, image1, image2, mode="test")
    jax.block_until_ready((pseudo_img1, pred_h4p_12))
    assert pseudo_img1.shape == (B, C, H, W)
    assert pred_h4p_12.shape == (B, 4, 2)

    # Correctness vs. pure-JAX reference (bf16 MXU inputs -> loose tolerance).
    ref_pseudo, ref_pred = jax.jit(_reference_test_forward)(params, image1, image2)
    np.testing.assert_allclose(np.asarray(pseudo_img1), np.asarray(ref_pseudo),
                               atol=5e-2, rtol=5e-2)
    np.testing.assert_allclose(np.asarray(pred_h4p_12), np.asarray(ref_pred),
                               atol=5e-2, rtol=5e-2)

    # Exercise the other forward modes (separate homo / modal kernels).
    pred_h4p_22 = fwd(params, image1, image2, mode="train22")
    jax.block_until_ready(pred_h4p_22)
    assert pred_h4p_22.shape == (B, 4, 2)

    pred_h4p_11 = fwd(params, image1, image2, mode="train11")
    jax.block_until_ready(pred_h4p_11)
    assert pred_h4p_11.shape == (B, 4, 2)

    print("KERNEL_OK")
</pallas_src>

<mosaic_0001>
module attributes {stable_mosaic.version = 11 : i64} {
  func.func @_sshnet_fused_kernel(%arg0: i32, %arg1: memref<1x4x256xf32, #tpu.memory_space<vmem>>, %arg2: memref<1x4x256xf32, #tpu.memory_space<vmem>>, %arg3: memref<9x8x4xbf16, #tpu.memory_space<vmem>>, %arg4: memref<8x1xf32, #tpu.memory_space<vmem>>, %arg5: memref<9x4x8xbf16, #tpu.memory_space<vmem>>, %arg6: memref<4x1xf32, #tpu.memory_space<vmem>>, %arg7: memref<9x16x4xbf16, #tpu.memory_space<vmem>>, %arg8: memref<9x16x4xbf16, #tpu.memory_space<vmem>>, %arg9: memref<16x1xf32, #tpu.memory_space<vmem>>, %arg10: memref<8x16xf32, #tpu.memory_space<vmem>>, %arg11: memref<8x1xf32, #tpu.memory_space<vmem>>, %arg12: memref<1x4x256xf32, #tpu.memory_space<vmem>>, %arg13: memref<1x8x1xf32, #tpu.memory_space<vmem>>) attributes {dimension_semantics = [#tpu.dimension_semantics<parallel>], iteration_bounds = array<i64: 2>, scalar_prefetch = 0 : i64, scratch_operands = 0 : i64, tpu.core_type = #tpu.core_type<tc>, window_params = [{transform_indices = @transform_0, window_bounds = array<i64: 1, 4, 256>}, {transform_indices = @transform_1, window_bounds = array<i64: 1, 4, 256>}, {pipeline_mode = #tpu.pipeline_mode<synchronous>, transform_indices = @transform_2, window_bounds = array<i64: 9, 8, 4>}, {pipeline_mode = #tpu.pipeline_mode<synchronous>, transform_indices = @transform_3, window_bounds = array<i64: 8, 1>}, {pipeline_mode = #tpu.pipeline_mode<synchronous>, transform_indices = @transform_4, window_bounds = array<i64: 9, 4, 8>}, {pipeline_mode = #tpu.pipeline_mode<synchronous>, transform_indices = @transform_5, window_bounds = array<i64: 4, 1>}, {pipeline_mode = #tpu.pipeline_mode<synchronous>, transform_indices = @transform_6, window_bounds = array<i64: 9, 16, 4>}, {pipeline_mode = #tpu.pipeline_mode<synchronous>, transform_indices = @transform_7, window_bounds = array<i64: 9, 16, 4>}, {pipeline_mode = #tpu.pipeline_mode<synchronous>, transform_indices = @transform_8, window_bounds = array<i64: 16, 1>}, {pipeline_mode = #tpu.pipeline_mode<synchronous>, transform_indices = @transform_9, window_bounds = array<i64: 8, 16>}, {pipeline_mode = #tpu.pipeline_mode<synchronous>, transform_indices = @transform_10, window_bounds = array<i64: 8, 1>}, {transform_indices = @transform_11, window_bounds = array<i64: 1, 4, 256>}, {transform_indices = @transform_12, window_bounds = array<i64: 1, 8, 1>}]} {
    %c0 = arith.constant 0 : index
    %c0_0 = arith.constant 0 : index
    %c0_1 = arith.constant 0 : index
    %0 = vector.load %arg1[%c0, %c0_0, %c0_1] : memref<1x4x256xf32, #tpu.memory_space<vmem>>, vector<1x4x256xf32>
    %1 = vector.shape_cast %0 : vector<1x4x256xf32> to vector<4x256xf32>
    %c0_2 = arith.constant 0 : index
    %c0_3 = arith.constant 0 : index
    %c0_4 = arith.constant 0 : index
    %2 = vector.load %arg2[%c0_2, %c0_3, %c0_4] : memref<1x4x256xf32, #tpu.memory_space<vmem>>, vector<1x4x256xf32>
    %3 = vector.shape_cast %2 : vector<1x4x256xf32> to vector<4x256xf32>
    %cst = arith.constant 0.000000e+00 : f32
    %4 = vector.broadcast %cst : f32 to vector<4x17xf32>
    %5 = tpu.concatenate %4, %1, %4 in 1 : vector<4x17xf32>, vector<4x256xf32>, vector<4x17xf32> -> vector<4x290xf32>
    %6 = tpu.iota {dimensions = array<i32: 1>} : vector<1x256xi32>
    %c16_i32 = arith.constant 16 : i32
    %c0_i32 = arith.constant 0 : i32
    %7 = arith.cmpi eq, %c16_i32, %c0_i32 : i32
    %c1_i32 = arith.constant 1 : i32
    %8 = arith.select %7, %c1_i32, %c16_i32 : i32
    %9 = vector.broadcast %8 : i32 to vector<1x256xi32>
    %10 = arith.remsi %6, %9 : vector<1x256xi32>
    %c0_i32_5 = arith.constant 0 : i32
    %11 = vector.broadcast %c0_i32_5 : i32 to vector<1x256xi32>
    %12 = arith.cmpi ne, %10, %11 : vector<1x256xi32>
    %c0_i32_6 = arith.constant 0 : i32
    %13 = vector.broadcast %c0_i32_6 : i32 to vector<1x256xi32>
    %14 = arith.cmpi slt, %10, %13 : vector<1x256xi32>
    %c0_i32_7 = arith.constant 0 : i32
    %15 = arith.cmpi slt, %8, %c0_i32_7 : i32
    %16 = vector.broadcast %15 : i1 to vector<1x256xi1>
    %17 = vector.broadcast %16 : vector<1x256xi1> to vector<1x256xi1>
    %18 = arith.xori %14, %17 : vector<1x256xi1>
    %19 = arith.andi %18, %12 : vector<1x256xi1>
    %20 = vector.broadcast %8 : i32 to vector<1x256xi32>
    %21 = arith.addi %10, %20 : vector<1x256xi32>
    %22 = arith.select %19, %21, %10 : vector<1x256xi1>, vector<1x256xi32>
    %c1_i32_8 = arith.constant 1 : i32
    %23 = vector.broadcast %c1_i32_8 : i32 to vector<1x256xi32>
    %24 = arith.cmpi sge, %22, %23 : vector<1x256xi32>
    %25 = arith.extui %24 : vector<1x256xi1> to vector<1x256xi32>
    %26 = arith.sitofp %25 : vector<1x256xi32> to vector<1x256xf32>
    %c14_i32 = arith.constant 14 : i32
    %27 = vector.broadcast %c14_i32 : i32 to vector<1x256xi32>
    %28 = arith.cmpi sle, %22, %27 : vector<1x256xi32>
    %29 = arith.extui %28 : vector<1x256xi1> to vector<1x256xi32>
    %30 = arith.sitofp %29 : vector<1x256xi32> to vector<1x256xf32>
    %cst_9 = arith.constant 0.000000e+00 : f32
    %31 = vector.broadcast %cst_9 : f32 to vector<8x256xf32>
    %32 = vector.extract_strided_slice %5 {offsets = [0, 0], sizes = [4, 256], strides = [1, 1]} : vector<4x290xf32> to vector<4x256xf32>
    %33 = vector.broadcast %26 : vector<1x256xf32> to vector<4x256xf32>
    %34 = arith.mulf %32, %33 : vector<4x256xf32>
    %c0_10 = arith.constant 0 : index
    %c0_11 = arith.constant 0 : index
    %c0_12 = arith.constant 0 : index
    %35 = vector.load %arg3[%c0_10, %c0_11, %c0_12] : memref<9x8x4xbf16, #tpu.memory_space<vmem>>, vector<1x8x4xbf16>
    %36 = vector.shape_cast %35 : vector<1x8x4xbf16> to vector<8x4xbf16>
    %37 = arith.truncf %34 : vector<4x256xf32> to vector<4x256xbf16>
    %cst_13 = arith.constant dense<0.000000e+00> : vector<8x256xf32>
    %38 = tpu.matmul %36, %37, %cst_13 {dimension_numbers = #tpu.dot_dimension_numbers<[1], [0], [0], [1], [0, 0, 1, 1], [], []>} : vector<8x4xbf16>, vector<4x256xbf16>, vector<8x256xf32> -> vector<8x256xf32>
    %39 = arith.addf %31, %38 : vector<8x256xf32>
    %40 = vector.extract_strided_slice %5 {offsets = [0, 1], sizes = [4, 256], strides = [1, 1]} : vector<4x290xf32> to vector<4x256xf32>
    %c1 = arith.constant 1 : index
    %c0_14 = arith.constant 0 : index
    %c0_15 = arith.constant 0 : index
    %41 = vector.load %arg3[%c1, %c0_14, %c0_15] : memref<9x8x4xbf16, #tpu.memory_space<vmem>>, vector<1x8x4xbf16>
    %42 = vector.shape_cast %41 : vector<1x8x4xbf16> to vector<8x4xbf16>
    %43 = arith.truncf %40 : vector<4x256xf32> to vector<4x256xbf16>
    %cst_16 = arith.constant dense<0.000000e+00> : vector<8x256xf32>
    %44 = tpu.matmul %42, %43, %cst_16 {dimension_numbers = #tpu.dot_dimension_numbers<[1], [0], [0], [1], [0, 0, 1, 1], [], []>} : vector<8x4xbf16>, vector<4x256xbf16>, vector<8x256xf32> -> vector<8x256xf32>
    %45 = arith.addf %39, %44 : vector<8x256xf32>
    %46 = vector.extract_strided_slice %5 {offsets = [0, 2], sizes = [4, 256], strides = [1, 1]} : vector<4x290xf32> to vector<4x256xf32>
    %47 = vector.broadcast %30 : vector<1x256xf32> to vector<4x256xf32>
    %48 = arith.mulf %46, %47 : vector<4x256xf32>
    %c2 = arith.constant 2 : index
    %c0_17 = arith.constant 0 : index
    %c0_18 = arith.constant 0 : index
    %49 = vector.load %arg3[%c2, %c0_17, %c0_18] : memref<9x8x4xbf16, #tpu.memory_space<vmem>>, vector<1x8x4xbf16>
    %50 = vector.shape_cast %49 : vector<1x8x4xbf16> to vector<8x4xbf16>
    %51 = arith.truncf %48 : vector<4x256xf32> to vector<4x256xbf16>
    %cst_19 = arith.constant dense<0.000000e+00> : vector<8x256xf32>
    %52 = tpu.matmul %50, %51, %cst_19 {dimension_numbers = #tpu.dot_dimension_numbers<[1], [0], [0], [1], [0, 0, 1, 1], [], []>} : vector<8x4xbf16>, vector<4x256xbf16>, vector<8x256xf32> -> vector<8x256xf32>
    %53 = arith.addf %45, %52 : vector<8x256xf32>
    %54 = vector.extract_strided_slice %5 {offsets = [0, 16], sizes = [4, 256], strides = [1, 1]} : vector<4x290xf32> to vector<4x256xf32>
    %55 = vector.broadcast %26 : vector<1x256xf32> to vector<4x256xf32>
    %56 = arith.mulf %54, %55 : vector<4x256xf32>
    %c3 = arith.constant 3 : index
    %c0_20 = arith.constant 0 : index
    %c0_21 = arith.constant 0 : index
    %57 = vector.load %arg3[%c3, %c0_20, %c0_21] : memref<9x8x4xbf16, #tpu.memory_space<vmem>>, vector<1x8x4xbf16>
    %58 = vector.shape_cast %57 : vector<1x8x4xbf16> to vector<8x4xbf16>
    %59 = arith.truncf %56 : vector<4x256xf32> to vector<4x256xbf16>
    %cst_22 = arith.constant dense<0.000000e+00> : vector<8x256xf32>
    %60 = tpu.matmul %58, %59, %cst_22 {dimension_numbers = #tpu.dot_dimension_numbers<[1], [0], [0], [1], [0, 0, 1, 1], [], []>} : vector<8x4xbf16>, vector<4x256xbf16>, vector<8x256xf32> -> vector<8x256xf32>
    %61 = arith.addf %53, %60 : vector<8x256xf32>
    %62 = vector.extract_strided_slice %5 {offsets = [0, 17], sizes = [4, 256], strides = [1, 1]} : vector<4x290xf32> to vector<4x256xf32>
    %c4 = arith.constant 4 : index
    %c0_23 = arith.constant 0 : index
    %c0_24 = arith.constant 0 : index
    %63 = vector.load %arg3[%c4, %c0_23, %c0_24] : memref<9x8x4xbf16, #tpu.memory_space<vmem>>, vector<1x8x4xbf16>
    %64 = vector.shape_cast %63 : vector<1x8x4xbf16> to vector<8x4xbf16>
    %65 = arith.truncf %62 : vector<4x256xf32> to vector<4x256xbf16>
    %cst_25 = arith.constant dense<0.000000e+00> : vector<8x256xf32>
    %66 = tpu.matmul %64, %65, %cst_25 {dimension_numbers = #tpu.dot_dimension_numbers<[1], [0], [0], [1], [0, 0, 1, 1], [], []>} : vector<8x4xbf16>, vector<4x256xbf16>, vector<8x256xf32> -> vector<8x256xf32>
    %67 = arith.addf %61, %66 : vector<8x256xf32>
    %68 = vector.extract_strided_slice %5 {offsets = [0, 18], sizes = [4, 256], strides = [1, 1]} : vector<4x290xf32> to vector<4x256xf32>
    %69 = vector.broadcast %30 : vector<1x256xf32> to vector<4x256xf32>
    %70 = arith.mulf %68, %69 : vector<4x256xf32>
    %c5 = arith.constant 5 : index
    %c0_26 = arith.constant 0 : index
    %c0_27 = arith.constant 0 : index
    %71 = vector.load %arg3[%c5, %c0_26, %c0_27] : memref<9x8x4xbf16, #tpu.memory_space<vmem>>, vector<1x8x4xbf16>
    %72 = vector.shape_cast %71 : vector<1x8x4xbf16> to vector<8x4xbf16>
    %73 = arith.truncf %70 : vector<4x256xf32> to vector<4x256xbf16>
    %cst_28 = arith.constant dense<0.000000e+00> : vector<8x256xf32>
    %74 = tpu.matmul %72, %73, %cst_28 {dimension_numbers = #tpu.dot_dimension_numbers<[1], [0], [0], [1], [0, 0, 1, 1], [], []>} : vector<8x4xbf16>, vector<4x256xbf16>, vector<8x256xf32> -> vector<8x256xf32>
    %75 = arith.addf %67, %74 : vector<8x256xf32>
    %76 = vector.extract_strided_slice %5 {offsets = [0, 32], sizes = [4, 256], strides = [1, 1]} : vector<4x290xf32> to vector<4x256xf32>
    %77 = vector.broadcast %26 : vector<1x256xf32> to vector<4x256xf32>
    %78 = arith.mulf %76, %77 : vector<4x256xf32>
    %c6 = arith.constant 6 : index
    %c0_29 = arith.constant 0 : index
    %c0_30 = arith.constant 0 : index
    %79 = vector.load %arg3[%c6, %c0_29, %c0_30] : memref<9x8x4xbf16, #tpu.memory_space<vmem>>, vector<1x8x4xbf16>
    %80 = vector.shape_cast %79 : vector<1x8x4xbf16> to vector<8x4xbf16>
    %81 = arith.truncf %78 : vector<4x256xf32> to vector<4x256xbf16>
    %cst_31 = arith.constant dense<0.000000e+00> : vector<8x256xf32>
    %82 = tpu.matmul %80, %81, %cst_31 {dimension_numbers = #tpu.dot_dimension_numbers<[1], [0], [0], [1], [0, 0, 1, 1], [], []>} : vector<8x4xbf16>, vector<4x256xbf16>, vector<8x256xf32> -> vector<8x256xf32>
    %83 = arith.addf %75, %82 : vector<8x256xf32>
    %84 = vector.extract_strided_slice %5 {offsets = [0, 33], sizes = [4, 256], strides = [1, 1]} : vector<4x290xf32> to vector<4x256xf32>
    %c7 = arith.constant 7 : index
    %c0_32 = arith.constant 0 : index
    %c0_33 = arith.constant 0 : index
    %85 = vector.load %arg3[%c7, %c0_32, %c0_33] : memref<9x8x4xbf16, #tpu.memory_space<vmem>>, vector<1x8x4xbf16>
    %86 = vector.shape_cast %85 : vector<1x8x4xbf16> to vector<8x4xbf16>
    %87 = arith.truncf %84 : vector<4x256xf32> to vector<4x256xbf16>
    %cst_34 = arith.constant dense<0.000000e+00> : vector<8x256xf32>
    %88 = tpu.matmul %86, %87, %cst_34 {dimension_numbers = #tpu.dot_dimension_numbers<[1], [0], [0], [1], [0, 0, 1, 1], [], []>} : vector<8x4xbf16>, vector<4x256xbf16>, vector<8x256xf32> -> vector<8x256xf32>
    %89 = arith.addf %83, %88 : vector<8x256xf32>
    %90 = vector.extract_strided_slice %5 {offsets = [0, 34], sizes = [4, 256], strides = [1, 1]} : vector<4x290xf32> to vector<4x256xf32>
    %91 = vector.broadcast %30 : vector<1x256xf32> to vector<4x256xf32>
    %92 = arith.mulf %90, %91 : vector<4x256xf32>
    %c8 = arith.constant 8 : index
    %c0_35 = arith.constant 0 : index
    %c0_36 = arith.constant 0 : index
    %93 = vector.load %arg3[%c8, %c0_35, %c0_36] : memref<9x8x4xbf16, #tpu.memory_space<vmem>>, vector<1x8x4xbf16>
    %94 = vector.shape_cast %93 : vector<1x8x4xbf16> to vector<8x4xbf16>
    %95 = arith.truncf %92 : vector<4x256xf32> to vector<4x256xbf16>
    %cst_37 = arith.constant dense<0.000000e+00> : vector<8x256xf32>
    %96 = tpu.matmul %94, %95, %cst_37 {dimension_numbers = #tpu.dot_dimension_numbers<[1], [0], [0], [1], [0, 0, 1, 1], [], []>} : vector<8x4xbf16>, vector<4x256xbf16>, vector<8x256xf32> -> vector<8x256xf32>
    %97 = arith.addf %89, %96 : vector<8x256xf32>
    %c0_38 = arith.constant 0 : index
    %c0_39 = arith.constant 0 : index
    %98 = vector.load %arg4[%c0_38, %c0_39] : memref<8x1xf32, #tpu.memory_space<vmem>>, vector<8x1xf32>
    %99 = vector.broadcast %98 : vector<8x1xf32> to vector<8x256xf32>
    %100 = arith.addf %97, %99 : vector<8x256xf32>
    %cst_40 = arith.constant 0.000000e+00 : f32
    %101 = vector.broadcast %cst_40 : f32 to vector<8x256xf32>
    %102 = arith.maximumf %100, %101 : vector<8x256xf32>
    %cst_41 = arith.constant 0.000000e+00 : f32
    %103 = vector.broadcast %cst_41 : f32 to vector<8x17xf32>
    %104 = tpu.concatenate %103, %102, %103 in 1 : vector<8x17xf32>, vector<8x256xf32>, vector<8x17xf32> -> vector<8x290xf32>
    %105 = tpu.iota {dimensions = array<i32: 1>} : vector<1x256xi32>
    %c16_i32_42 = arith.constant 16 : i32
    %c0_i32_43 = arith.constant 0 : i32
    %106 = arith.cmpi eq, %c16_i32_42, %c0_i32_43 : i32
    %c1_i32_44 = arith.constant 1 : i32
    %107 = arith.select %106, %c1_i32_44, %c16_i32_42 : i32
    %108 = vector.broadcast %107 : i32 to vector<1x256xi32>
    %109 = arith.remsi %105, %108 : vector<1x256xi32>
    %c0_i32_45 = arith.constant 0 : i32
    %110 = vector.broadcast %c0_i32_45 : i32 to vector<1x256xi32>
    %111 = arith.cmpi ne, %109, %110 : vector<1x256xi32>
    %c0_i32_46 = arith.constant 0 : i32
    %112 = vector.broadcast %c0_i32_46 : i32 to vector<1x256xi32>
    %113 = arith.cmpi slt, %109, %112 : vector<1x256xi32>
    %c0_i32_47 = arith.constant 0 : i32
    %114 = arith.cmpi slt, %107, %c0_i32_47 : i32
    %115 = vector.broadcast %114 : i1 to vector<1x256xi1>
    %116 = vector.broadcast %115 : vector<1x256xi1> to vector<1x256xi1>
    %117 = arith.xori %113, %116 : vector<1x256xi1>
    %118 = arith.andi %117, %111 : vector<1x256xi1>
    %119 = vector.broadcast %107 : i32 to vector<1x256xi32>
    %120 = arith.addi %109, %119 : vector<1x256xi32>
    %121 = arith.select %118, %120, %109 : vector<1x256xi1>, vector<1x256xi32>
    %c1_i32_48 = arith.constant 1 : i32
    %122 = vector.broadcast %c1_i32_48 : i32 to vector<1x256xi32>
    %123 = arith.cmpi sge, %121, %122 : vector<1x256xi32>
    %124 = arith.extui %123 : vector<1x256xi1> to vector<1x256xi32>
    %125 = arith.sitofp %124 : vector<1x256xi32> to vector<1x256xf32>
    %c14_i32_49 = arith.constant 14 : i32
    %126 = vector.broadcast %c14_i32_49 : i32 to vector<1x256xi32>
    %127 = arith.cmpi sle, %121, %126 : vector<1x256xi32>
    %128 = arith.extui %127 : vector<1x256xi1> to vector<1x256xi32>
    %129 = arith.sitofp %128 : vector<1x256xi32> to vector<1x256xf32>
    %cst_50 = arith.constant 0.000000e+00 : f32
    %130 = vector.broadcast %cst_50 : f32 to vector<4x256xf32>
    %131 = vector.extract_strided_slice %104 {offsets = [0, 0], sizes = [8, 256], strides = [1, 1]} : vector<8x290xf32> to vector<8x256xf32>
    %132 = vector.broadcast %125 : vector<1x256xf32> to vector<8x256xf32>
    %133 = arith.mulf %131, %132 : vector<8x256xf32>
    %c0_51 = arith.constant 0 : index
    %c0_52 = arith.constant 0 : index
    %c0_53 = arith.constant 0 : index
    %134 = vector.load %arg5[%c0_51, %c0_52, %c0_53] : memref<9x4x8xbf16, #tpu.memory_space<vmem>>, vector<1x4x8xbf16>
    %135 = vector.shape_cast %134 : vector<1x4x8xbf16> to vector<4x8xbf16>
    %136 = arith.truncf %133 : vector<8x256xf32> to vector<8x256xbf16>
    %cst_54 = arith.constant dense<0.000000e+00> : vector<4x256xf32>
    %137 = tpu.matmul %135, %136, %cst_54 {dimension_numbers = #tpu.dot_dimension_numbers<[1], [0], [0], [1], [0, 0, 1, 1], [], []>} : vector<4x8xbf16>, vector<8x256xbf16>, vector<4x256xf32> -> vector<4x256xf32>
    %138 = arith.addf %130, %137 : vector<4x256xf32>
    %139 = vector.extract_strided_slice %104 {offsets = [0, 1], sizes = [8, 256], strides = [1, 1]} : vector<8x290xf32> to vector<8x256xf32>
    %c1_55 = arith.constant 1 : index
    %c0_56 = arith.constant 0 : index
    %c0_57 = arith.constant 0 : index
    %140 = vector.load %arg5[%c1_55, %c0_56, %c0_57] : memref<9x4x8xbf16, #tpu.memory_space<vmem>>, vector<1x4x8xbf16>
    %141 = vector.shape_cast %140 : vector<1x4x8xbf16> to vector<4x8xbf16>
    %142 = arith.truncf %139 : vector<8x256xf32> to vector<8x256xbf16>
    %cst_58 = arith.constant dense<0.000000e+00> : vector<4x256xf32>
    %143 = tpu.matmul %141, %142, %cst_58 {dimension_numbers = #tpu.dot_dimension_numbers<[1], [0], [0], [1], [0, 0, 1, 1], [], []>} : vector<4x8xbf16>, vector<8x256xbf16>, vector<4x256xf32> -> vector<4x256xf32>
    %144 = arith.addf %138, %143 : vector<4x256xf32>
    %145 = vector.extract_strided_slice %104 {offsets = [0, 2], sizes = [8, 256], strides = [1, 1]} : vector<8x290xf32> to vector<8x256xf32>
    %146 = vector.broadcast %129 : vector<1x256xf32> to vector<8x256xf32>
    %147 = arith.mulf %145, %146 : vector<8x256xf32>
    %c2_59 = arith.constant 2 : index
    %c0_60 = arith.constant 0 : index
    %c0_61 = arith.constant 0 : index
    %148 = vector.load %arg5[%c2_59, %c0_60, %c0_61] : memref<9x4x8xbf16, #tpu.memory_space<vmem>>, vector<1x4x8xbf16>
    %149 = vector.shape_cast %148 : vector<1x4x8xbf16> to vector<4x8xbf16>
    %150 = arith.truncf %147 : vector<8x256xf32> to vector<8x256xbf16>
    %cst_62 = arith.constant dense<0.000000e+00> : vector<4x256xf32>
    %151 = tpu.matmul %149, %150, %cst_62 {dimension_numbers = #tpu.dot_dimension_numbers<[1], [0], [0], [1], [0, 0, 1, 1], [], []>} : vector<4x8xbf16>, vector<8x256xbf16>, vector<4x256xf32> -> vector<4x256xf32>
    %152 = arith.addf %144, %151 : vector<4x256xf32>
    %153 = vector.extract_strided_slice %104 {offsets = [0, 16], sizes = [8, 256], strides = [1, 1]} : vector<8x290xf32> to vector<8x256xf32>
    %154 = vector.broadcast %125 : vector<1x256xf32> to vector<8x256xf32>
    %155 = arith.mulf %153, %154 : vector<8x256xf32>
    %c3_63 = arith.constant 3 : index
    %c0_64 = arith.constant 0 : index
    %c0_65 = arith.constant 0 : index
    %156 = vector.load %arg5[%c3_63, %c0_64, %c0_65] : memref<9x4x8xbf16, #tpu.memory_space<vmem>>, vector<1x4x8xbf16>
    %157 = vector.shape_cast %156 : vector<1x4x8xbf16> to vector<4x8xbf16>
    %158 = arith.truncf %155 : vector<8x256xf32> to vector<8x256xbf16>
    %cst_66 = arith.constant dense<0.000000e+00> : vector<4x256xf32>
    %159 = tpu.matmul %157, %158, %cst_66 {dimension_numbers = #tpu.dot_dimension_numbers<[1], [0], [0], [1], [0, 0, 1, 1], [], []>} : vector<4x8xbf16>, vector<8x256xbf16>, vector<4x256xf32> -> vector<4x256xf32>
    %160 = arith.addf %152, %159 : vector<4x256xf32>
    %161 = vector.extract_strided_slice %104 {offsets = [0, 17], sizes = [8, 256], strides = [1, 1]} : vector<8x290xf32> to vector<8x256xf32>
    %c4_67 = arith.constant 4 : index
    %c0_68 = arith.constant 0 : index
    %c0_69 = arith.constant 0 : index
    %162 = vector.load %arg5[%c4_67, %c0_68, %c0_69] : memref<9x4x8xbf16, #tpu.memory_space<vmem>>, vector<1x4x8xbf16>
    %163 = vector.shape_cast %162 : vector<1x4x8xbf16> to vector<4x8xbf16>
    %164 = arith.truncf %161 : vector<8x256xf32> to vector<8x256xbf16>
    %cst_70 = arith.constant dense<0.000000e+00> : vector<4x256xf32>
    %165 = tpu.matmul %163, %164, %cst_70 {dimension_numbers = #tpu.dot_dimension_numbers<[1], [0], [0], [1], [0, 0, 1, 1], [], []>} : vector<4x8xbf16>, vector<8x256xbf16>, vector<4x256xf32> -> vector<4x256xf32>
    %166 = arith.addf %160, %165 : vector<4x256xf32>
    %167 = vector.extract_strided_slice %104 {offsets = [0, 18], sizes = [8, 256], strides = [1, 1]} : vector<8x290xf32> to vector<8x256xf32>
    %168 = vector.broadcast %129 : vector<1x256xf32> to vector<8x256xf32>
    %169 = arith.mulf %167, %168 : vector<8x256xf32>
    %c5_71 = arith.constant 5 : index
    %c0_72 = arith.constant 0 : index
    %c0_73 = arith.constant 0 : index
    %170 = vector.load %arg5[%c5_71, %c0_72, %c0_73] : memref<9x4x8xbf16, #tpu.memory_space<vmem>>, vector<1x4x8xbf16>
    %171 = vector.shape_cast %170 : vector<1x4x8xbf16> to vector<4x8xbf16>
    %172 = arith.truncf %169 : vector<8x256xf32> to vector<8x256xbf16>
    %cst_74 = arith.constant dense<0.000000e+00> : vector<4x256xf32>
    %173 = tpu.matmul %171, %172, %cst_74 {dimension_numbers = #tpu.dot_dimension_numbers<[1], [0], [0], [1], [0, 0, 1, 1], [], []>} : vector<4x8xbf16>, vector<8x256xbf16>, vector<4x256xf32> -> vector<4x256xf32>
    %174 = arith.addf %166, %173 : vector<4x256xf32>
    %175 = vector.extract_strided_slice %104 {offsets = [0, 32], sizes = [8, 256], strides = [1, 1]} : vector<8x290xf32> to vector<8x256xf32>
    %176 = vector.broadcast %125 : vector<1x256xf32> to vector<8x256xf32>
    %177 = arith.mulf %175, %176 : vector<8x256xf32>
    %c6_75 = arith.constant 6 : index
    %c0_76 = arith.constant 0 : index
    %c0_77 = arith.constant 0 : index
    %178 = vector.load %arg5[%c6_75, %c0_76, %c0_77] : memref<9x4x8xbf16, #tpu.memory_space<vmem>>, vector<1x4x8xbf16>
    %179 = vector.shape_cast %178 : vector<1x4x8xbf16> to vector<4x8xbf16>
    %180 = arith.truncf %177 : vector<8x256xf32> to vector<8x256xbf16>
    %cst_78 = arith.constant dense<0.000000e+00> : vector<4x256xf32>
    %181 = tpu.matmul %179, %180, %cst_78 {dimension_numbers = #tpu.dot_dimension_numbers<[1], [0], [0], [1], [0, 0, 1, 1], [], []>} : vector<4x8xbf16>, vector<8x256xbf16>, vector<4x256xf32> -> vector<4x256xf32>
    %182 = arith.addf %174, %181 : vector<4x256xf32>
    %183 = vector.extract_strided_slice %104 {offsets = [0, 33], sizes = [8, 256], strides = [1, 1]} : vector<8x290xf32> to vector<8x256xf32>
    %c7_79 = arith.constant 7 : index
    %c0_80 = arith.constant 0 : index
    %c0_81 = arith.constant 0 : index
    %184 = vector.load %arg5[%c7_79, %c0_80, %c0_81] : memref<9x4x8xbf16, #tpu.memory_space<vmem>>, vector<1x4x8xbf16>
    %185 = vector.shape_cast %184 : vector<1x4x8xbf16> to vector<4x8xbf16>
    %186 = arith.truncf %183 : vector<8x256xf32> to vector<8x256xbf16>
    %cst_82 = arith.constant dense<0.000000e+00> : vector<4x256xf32>
    %187 = tpu.matmul %185, %186, %cst_82 {dimension_numbers = #tpu.dot_dimension_numbers<[1], [0], [0], [1], [0, 0, 1, 1], [], []>} : vector<4x8xbf16>, vector<8x256xbf16>, vector<4x256xf32> -> vector<4x256xf32>
    %188 = arith.addf %182, %187 : vector<4x256xf32>
    %189 = vector.extract_strided_slice %104 {offsets = [0, 34], sizes = [8, 256], strides = [1, 1]} : vector<8x290xf32> to vector<8x256xf32>
    %190 = vector.broadcast %129 : vector<1x256xf32> to vector<8x256xf32>
    %191 = arith.mulf %189, %190 : vector<8x256xf32>
    %c8_83 = arith.constant 8 : index
    %c0_84 = arith.constant 0 : index
    %c0_85 = arith.constant 0 : index
    %192 = vector.load %arg5[%c8_83, %c0_84, %c0_85] : memref<9x4x8xbf16, #tpu.memory_space<vmem>>, vector<1x4x8xbf16>
    %193 = vector.shape_cast %192 : vector<1x4x8xbf16> to vector<4x8xbf16>
    %194 = arith.truncf %191 : vector<8x256xf32> to vector<8x256xbf16>
    %cst_86 = arith.constant dense<0.000000e+00> : vector<4x256xf32>
    %195 = tpu.matmul %193, %194, %cst_86 {dimension_numbers = #tpu.dot_dimension_numbers<[1], [0], [0], [1], [0, 0, 1, 1], [], []>} : vector<4x8xbf16>, vector<8x256xbf16>, vector<4x256xf32> -> vector<4x256xf32>
    %196 = arith.addf %188, %195 : vector<4x256xf32>
    %c0_87 = arith.constant 0 : index
    %c0_88 = arith.constant 0 : index
    %197 = vector.load %arg6[%c0_87, %c0_88] : memref<4x1xf32, #tpu.memory_space<vmem>>, vector<4x1xf32>
    %198 = vector.broadcast %197 : vector<4x1xf32> to vector<4x256xf32>
    %199 = arith.addf %196, %198 : vector<4x256xf32>
    %c0_89 = arith.constant 0 : index
    %c0_90 = arith.constant 0 : index
    %c0_91 = arith.constant 0 : index
    %200 = vector.load %arg12[%c0_89, %c0_90, %c0_91] : memref<1x4x256xf32, #tpu.memory_space<vmem>>, vector<1x4x256xf32>
    %201 = vector.shape_cast %200 : vector<1x4x256xf32> to vector<4x256xf32>
    %202 = vector.shape_cast %199 : vector<4x256xf32> to vector<1x4x256xf32>
    tpu.vector_store %arg12[%c0_89, %c0_90, %c0_91], %202 {strides = array<i32>} : memref<1x4x256xf32, #tpu.memory_space<vmem>>, vector<1x4x256xf32>,
    %cst_92 = arith.constant 0.000000e+00 : f32
    %203 = vector.broadcast %cst_92 : f32 to vector<4x17xf32>
    %204 = tpu.concatenate %203, %199, %203 in 1 : vector<4x17xf32>, vector<4x256xf32>, vector<4x17xf32> -> vector<4x290xf32>
    %205 = tpu.iota {dimensions = array<i32: 1>} : vector<1x256xi32>
    %c16_i32_93 = arith.constant 16 : i32
    %c0_i32_94 = arith.constant 0 : i32
    %206 = arith.cmpi eq, %c16_i32_93, %c0_i32_94 : i32
    %c1_i32_95 = arith.constant 1 : i32
    %207 = arith.select %206, %c1_i32_95, %c16_i32_93 : i32
    %208 = vector.broadcast %207 : i32 to vector<1x256xi32>
    %209 = arith.remsi %205, %208 : vector<1x256xi32>
    %c0_i32_96 = arith.constant 0 : i32
    %210 = vector.broadcast %c0_i32_96 : i32 to vector<1x256xi32>
    %211 = arith.cmpi ne, %209, %210 : vector<1x256xi32>
    %c0_i32_97 = arith.constant 0 : i32
    %212 = vector.broadcast %c0_i32_97 : i32 to vector<1x256xi32>
    %213 = arith.cmpi slt, %209, %212 : vector<1x256xi32>
    %c0_i32_98 = arith.constant 0 : i32
    %214 = arith.cmpi slt, %207, %c0_i32_98 : i32
    %215 = vector.broadcast %214 : i1 to vector<1x256xi1>
    %216 = vector.broadcast %215 : vector<1x256xi1> to vector<1x256xi1>
    %217 = arith.xori %213, %216 : vector<1x256xi1>
    %218 = arith.andi %217, %211 : vector<1x256xi1>
    %219 = vector.broadcast %207 : i32 to vector<1x256xi32>
    %220 = arith.addi %209, %219 : vector<1x256xi32>
    %221 = arith.select %218, %220, %209 : vector<1x256xi1>, vector<1x256xi32>
    %c1_i32_99 = arith.constant 1 : i32
    %222 = vector.broadcast %c1_i32_99 : i32 to vector<1x256xi32>
    %223 = arith.cmpi sge, %221, %222 : vector<1x256xi32>
    %224 = arith.extui %223 : vector<1x256xi1> to vector<1x256xi32>
    %225 = arith.sitofp %224 : vector<1x256xi32> to vector<1x256xf32>
    %c14_i32_100 = arith.constant 14 : i32
    %226 = vector.broadcast %c14_i32_100 : i32 to vector<1x256xi32>
    %227 = arith.cmpi sle, %221, %226 : vector<1x256xi32>
    %228 = arith.extui %227 : vector<1x256xi1> to vector<1x256xi32>
    %229 = arith.sitofp %228 : vector<1x256xi32> to vector<1x256xf32>
    %cst_101 = arith.constant 0.000000e+00 : f32
    %230 = vector.broadcast %cst_101 : f32 to vector<16x256xf32>
    %231 = vector.extract_strided_slice %204 {offsets = [0, 0], sizes = [4, 256], strides = [1, 1]} : vector<4x290xf32> to vector<4x256xf32>
    %232 = vector.broadcast %225 : vector<1x256xf32> to vector<4x256xf32>
    %233 = arith.mulf %231, %232 : vector<4x256xf32>
    %c0_102 = arith.constant 0 : index
    %c0_103 = arith.constant 0 : index
    %c0_104 = arith.constant 0 : index
    %234 = vector.load %arg7[%c0_102, %c0_103, %c0_104] : memref<9x16x4xbf16, #tpu.memory_space<vmem>>, vector<1x16x4xbf16>
    %235 = vector.shape_cast %234 : vector<1x16x4xbf16> to vector<16x4xbf16>
    %236 = arith.truncf %233 : vector<4x256xf32> to vector<4x256xbf16>
    %cst_105 = arith.constant dense<0.000000e+00> : vector<16x256xf32>
    %237 = tpu.matmul %235, %236, %cst_105 {dimension_numbers = #tpu.dot_dimension_numbers<[1], [0], [0], [1], [0, 0, 1, 1], [], []>} : vector<16x4xbf16>, vector<4x256xbf16>, vector<16x256xf32> -> vector<16x256xf32>
    %238 = arith.addf %230, %237 : vector<16x256xf32>
    %239 = vector.extract_strided_slice %204 {offsets = [0, 1], sizes = [4, 256], strides = [1, 1]} : vector<4x290xf32> to vector<4x256xf32>
    %c1_106 = arith.constant 1 : index
    %c0_107 = arith.constant 0 : index
    %c0_108 = arith.constant 0 : index
    %240 = vector.load %arg7[%c1_106, %c0_107, %c0_108] : memref<9x16x4xbf16, #tpu.memory_space<vmem>>, vector<1x16x4xbf16>
    %241 = vector.shape_cast %240 : vector<1x16x4xbf16> to vector<16x4xbf16>
    %242 = arith.truncf %239 : vector<4x256xf32> to vector<4x256xbf16>
    %cst_109 = arith.constant dense<0.000000e+00> : vector<16x256xf32>
    %243 = tpu.matmul %241, %242, %cst_109 {dimension_numbers = #tpu.dot_dimension_numbers<[1], [0], [0], [1], [0, 0, 1, 1], [], []>} : vector<16x4xbf16>, vector<4x256xbf16>, vector<16x256xf32> -> vector<16x256xf32>
    %244 = arith.addf %238, %243 : vector<16x256xf32>
    %245 = vector.extract_strided_slice %204 {offsets = [0, 2], sizes = [4, 256], strides = [1, 1]} : vector<4x290xf32> to vector<4x256xf32>
    %246 = vector.broadcast %229 : vector<1x256xf32> to vector<4x256xf32>
    %247 = arith.mulf %245, %246 : vector<4x256xf32>
    %c2_110 = arith.constant 2 : index
    %c0_111 = arith.constant 0 : index
    %c0_112 = arith.constant 0 : index
    %248 = vector.load %arg7[%c2_110, %c0_111, %c0_112] : memref<9x16x4xbf16, #tpu.memory_space<vmem>>, vector<1x16x4xbf16>
    %249 = vector.shape_cast %248 : vector<1x16x4xbf16> to vector<16x4xbf16>
    %250 = arith.truncf %247 : vector<4x256xf32> to vector<4x256xbf16>
    %cst_113 = arith.constant dense<0.000000e+00> : vector<16x256xf32>
    %251 = tpu.matmul %249, %250, %cst_113 {dimension_numbers = #tpu.dot_dimension_numbers<[1], [0], [0], [1], [0, 0, 1, 1], [], []>} : vector<16x4xbf16>, vector<4x256xbf16>, vector<16x256xf32> -> vector<16x256xf32>
    %252 = arith.addf %244, %251 : vector<16x256xf32>
    %253 = vector.extract_strided_slice %204 {offsets = [0, 16], sizes = [4, 256], strides = [1, 1]} : vector<4x290xf32> to vector<4x256xf32>
    %254 = vector.broadcast %225 : vector<1x256xf32> to vector<4x256xf32>
    %255 = arith.mulf %253, %254 : vector<4x256xf32>
    %c3_114 = arith.constant 3 : index
    %c0_115 = arith.constant 0 : index
    %c0_116 = arith.constant 0 : index
    %256 = vector.load %arg7[%c3_114, %c0_115, %c0_116] : memref<9x16x4xbf16, #tpu.memory_space<vmem>>, vector<1x16x4xbf16>
    %257 = vector.shape_cast %256 : vector<1x16x4xbf16> to vector<16x4xbf16>
    %258 = arith.truncf %255 : vector<4x256xf32> to vector<4x256xbf16>
    %cst_117 = arith.constant dense<0.000000e+00> : vector<16x256xf32>
    %259 = tpu.matmul %257, %258, %cst_117 {dimension_numbers = #tpu.dot_dimension_numbers<[1], [0], [0], [1], [0, 0, 1, 1], [], []>} : vector<16x4xbf16>, vector<4x256xbf16>, vector<16x256xf32> -> vector<16x256xf32>
    %260 = arith.addf %252, %259 : vector<16x256xf32>
    %261 = vector.extract_strided_slice %204 {offsets = [0, 17], sizes = [4, 256], strides = [1, 1]} : vector<4x290xf32> to vector<4x256xf32>
    %c4_118 = arith.constant 4 : index
    %c0_119 = arith.constant 0 : index
    %c0_120 = arith.constant 0 : index
    %262 = vector.load %arg7[%c4_118, %c0_119, %c0_120] : memref<9x16x4xbf16, #tpu.memory_space<vmem>>, vector<1x16x4xbf16>
    %263 = vector.shape_cast %262 : vector<1x16x4xbf16> to vector<16x4xbf16>
    %264 = arith.truncf %261 : vector<4x256xf32> to vector<4x256xbf16>
    %cst_121 = arith.constant dense<0.000000e+00> : vector<16x256xf32>
    %265 = tpu.matmul %263, %264, %cst_121 {dimension_numbers = #tpu.dot_dimension_numbers<[1], [0], [0], [1], [0, 0, 1, 1], [], []>} : vector<16x4xbf16>, vector<4x256xbf16>, vector<16x256xf32> -> vector<16x256xf32>
    %266 = arith.addf %260, %265 : vector<16x256xf32>
    %267 = vector.extract_strided_slice %204 {offsets = [0, 18], sizes = [4, 256], strides = [1, 1]} : vector<4x290xf32> to vector<4x256xf32>
    %268 = vector.broadcast %229 : vector<1x256xf32> to vector<4x256xf32>
    %269 = arith.mulf %267, %268 : vector<4x256xf32>
    %c5_122 = arith.constant 5 : index
    %c0_123 = arith.constant 0 : index
    %c0_124 = arith.constant 0 : index
    %270 = vector.load %arg7[%c5_122, %c0_123, %c0_124] : memref<9x16x4xbf16, #tpu.memory_space<vmem>>, vector<1x16x4xbf16>
    %271 = vector.shape_cast %270 : vector<1x16x4xbf16> to vector<16x4xbf16>
    %272 = arith.truncf %269 : vector<4x256xf32> to vector<4x256xbf16>
    %cst_125 = arith.constant dense<0.000000e+00> : vector<16x256xf32>
    %273 = tpu.matmul %271, %272, %cst_125 {dimension_numbers = #tpu.dot_dimension_numbers<[1], [0], [0], [1], [0, 0, 1, 1], [], []>} : vector<16x4xbf16>, vector<4x256xbf16>, vector<16x256xf32> -> vector<16x256xf32>
    %274 = arith.addf %266, %273 : vector<16x256xf32>
    %275 = vector.extract_strided_slice %204 {offsets = [0, 32], sizes = [4, 256], strides = [1, 1]} : vector<4x290xf32> to vector<4x256xf32>
    %276 = vector.broadcast %225 : vector<1x256xf32> to vector<4x256xf32>
    %277 = arith.mulf %275, %276 : vector<4x256xf32>
    %c6_126 = arith.constant 6 : index
    %c0_127 = arith.constant 0 : index
    %c0_128 = arith.constant 0 : index
    %278 = vector.load %arg7[%c6_126, %c0_127, %c0_128] : memref<9x16x4xbf16, #tpu.memory_space<vmem>>, vector<1x16x4xbf16>
    %279 = vector.shape_cast %278 : vector<1x16x4xbf16> to vector<16x4xbf16>
    %280 = arith.truncf %277 : vector<4x256xf32> to vector<4x256xbf16>
    %cst_129 = arith.constant dense<0.000000e+00> : vector<16x256xf32>
    %281 = tpu.matmul %279, %280, %cst_129 {dimension_numbers = #tpu.dot_dimension_numbers<[1], [0], [0], [1], [0, 0, 1, 1], [], []>} : vector<16x4xbf16>, vector<4x256xbf16>, vector<16x256xf32> -> vector<16x256xf32>
    %282 = arith.addf %274, %281 : vector<16x256xf32>
    %283 = vector.extract_strided_slice %204 {offsets = [0, 33], sizes = [4, 256], strides = [1, 1]} : vector<4x290xf32> to vector<4x256xf32>
    %c7_130 = arith.constant 7 : index
    %c0_131 = arith.constant 0 : index
    %c0_132 = arith.constant 0 : index
    %284 = vector.load %arg7[%c7_130, %c0_131, %c0_132] : memref<9x16x4xbf16, #tpu.memory_space<vmem>>, vector<1x16x4xbf16>
    %285 = vector.shape_cast %284 : vector<1x16x4xbf16> to vector<16x4xbf16>
    %286 = arith.truncf %283 : vector<4x256xf32> to vector<4x256xbf16>
    %cst_133 = arith.constant dense<0.000000e+00> : vector<16x256xf32>
    %287 = tpu.matmul %285, %286, %cst_133 {dimension_numbers = #tpu.dot_dimension_numbers<[1], [0], [0], [1], [0, 0, 1, 1], [], []>} : vector<16x4xbf16>, vector<4x256xbf16>, vector<16x256xf32> -> vector<16x256xf32>
    %288 = arith.addf %282, %287 : vector<16x256xf32>
    %289 = vector.extract_strided_slice %204 {offsets = [0, 34], sizes = [4, 256], strides = [1, 1]} : vector<4x290xf32> to vector<4x256xf32>
    %290 = vector.broadcast %229 : vector<1x256xf32> to vector<4x256xf32>
    %291 = arith.mulf %289, %290 : vector<4x256xf32>
    %c8_134 = arith.constant 8 : index
    %c0_135 = arith.constant 0 : index
    %c0_136 = arith.constant 0 : index
    %292 = vector.load %arg7[%c8_134, %c0_135, %c0_136] : memref<9x16x4xbf16, #tpu.memory_space<vmem>>, vector<1x16x4xbf16>
    %293 = vector.shape_cast %292 : vector<1x16x4xbf16> to vector<16x4xbf16>
    %294 = arith.truncf %291 : vector<4x256xf32> to vector<4x256xbf16>
    %cst_137 = arith.constant dense<0.000000e+00> : vector<16x256xf32>
    %295 = tpu.matmul %293, %294, %cst_137 {dimension_numbers = #tpu.dot_dimension_numbers<[1], [0], [0], [1], [0, 0, 1, 1], [], []>} : vector<16x4xbf16>, vector<4x256xbf16>, vector<16x256xf32> -> vector<16x256xf32>
    %296 = arith.addf %288, %295 : vector<16x256xf32>
    %cst_138 = arith.constant 0.000000e+00 : f32
    %297 = vector.broadcast %cst_138 : f32 to vector<4x17xf32>
    %298 = tpu.concatenate %297, %3, %297 in 1 : vector<4x17xf32>, vector<4x256xf32>, vector<4x17xf32> -> vector<4x290xf32>
    %299 = tpu.iota {dimensions = array<i32: 1>} : vector<1x256xi32>
    %c16_i32_139 = arith.constant 16 : i32
    %c0_i32_140 = arith.constant 0 : i32
    %300 = arith.cmpi eq, %c16_i32_139, %c0_i32_140 : i32
    %c1_i32_141 = arith.constant 1 : i32
    %301 = arith.select %300, %c1_i32_141, %c16_i32_139 : i32
    %302 = vector.broadcast %301 : i32 to vector<1x256xi32>
    %303 = arith.remsi %299, %302 : vector<1x256xi32>
    %c0_i32_142 = arith.constant 0 : i32
    %304 = vector.broadcast %c0_i32_142 : i32 to vector<1x256xi32>
    %305 = arith.cmpi ne, %303, %304 : vector<1x256xi32>
    %c0_i32_143 = arith.constant 0 : i32
    %306 = vector.broadcast %c0_i32_143 : i32 to vector<1x256xi32>
    %307 = arith.cmpi slt, %303, %306 : vector<1x256xi32>
    %c0_i32_144 = arith.constant 0 : i32
    %308 = arith.cmpi slt, %301, %c0_i32_144 : i32
    %309 = vector.broadcast %308 : i1 to vector<1x256xi1>
    %310 = vector.broadcast %309 : vector<1x256xi1> to vector<1x256xi1>
    %311 = arith.xori %307, %310 : vector<1x256xi1>
    %312 = arith.andi %311, %305 : vector<1x256xi1>
    %313 = vector.broadcast %301 : i32 to vector<1x256xi32>
    %314 = arith.addi %303, %313 : vector<1x256xi32>
    %315 = arith.select %312, %314, %303 : vector<1x256xi1>, vector<1x256xi32>
    %c1_i32_145 = arith.constant 1 : i32
    %316 = vector.broadcast %c1_i32_145 : i32 to vector<1x256xi32>
    %317 = arith.cmpi sge, %315, %316 : vector<1x256xi32>
    %318 = arith.extui %317 : vector<1x256xi1> to vector<1x256xi32>
    %319 = arith.sitofp %318 : vector<1x256xi32> to vector<1x256xf32>
    %c14_i32_146 = arith.constant 14 : i32
    %320 = vector.broadcast %c14_i32_146 : i32 to vector<1x256xi32>
    %321 = arith.cmpi sle, %315, %320 : vector<1x256xi32>
    %322 = arith.extui %321 : vector<1x256xi1> to vector<1x256xi32>
    %323 = arith.sitofp %322 : vector<1x256xi32> to vector<1x256xf32>
    %cst_147 = arith.constant 0.000000e+00 : f32
    %324 = vector.broadcast %cst_147 : f32 to vector<16x256xf32>
    %325 = vector.extract_strided_slice %298 {offsets = [0, 0], sizes = [4, 256], strides = [1, 1]} : vector<4x290xf32> to vector<4x256xf32>
    %326 = vector.broadcast %319 : vector<1x256xf32> to vector<4x256xf32>
    %327 = arith.mulf %325, %326 : vector<4x256xf32>
    %c0_148 = arith.constant 0 : index
    %c0_149 = arith.constant 0 : index
    %c0_150 = arith.constant 0 : index
    %328 = vector.load %arg8[%c0_148, %c0_149, %c0_150] : memref<9x16x4xbf16, #tpu.memory_space<vmem>>, vector<1x16x4xbf16>
    %329 = vector.shape_cast %328 : vector<1x16x4xbf16> to vector<16x4xbf16>
    %330 = arith.truncf %327 : vector<4x256xf32> to vector<4x256xbf16>
    %cst_151 = arith.constant dense<0.000000e+00> : vector<16x256xf32>
    %331 = tpu.matmul %329, %330, %cst_151 {dimension_numbers = #tpu.dot_dimension_numbers<[1], [0], [0], [1], [0, 0, 1, 1], [], []>} : vector<16x4xbf16>, vector<4x256xbf16>, vector<16x256xf32> -> vector<16x256xf32>
    %332 = arith.addf %324, %331 : vector<16x256xf32>
    %333 = vector.extract_strided_slice %298 {offsets = [0, 1], sizes = [4, 256], strides = [1, 1]} : vector<4x290xf32> to vector<4x256xf32>
    %c1_152 = arith.constant 1 : index
    %c0_153 = arith.constant 0 : index
    %c0_154 = arith.constant 0 : index
    %334 = vector.load %arg8[%c1_152, %c0_153, %c0_154] : memref<9x16x4xbf16, #tpu.memory_space<vmem>>, vector<1x16x4xbf16>
    %335 = vector.shape_cast %334 : vector<1x16x4xbf16> to vector<16x4xbf16>
    %336 = arith.truncf %333 : vector<4x256xf32> to vector<4x256xbf16>
    %cst_155 = arith.constant dense<0.000000e+00> : vector<16x256xf32>
    %337 = tpu.matmul %335, %336, %cst_155 {dimension_numbers = #tpu.dot_dimension_numbers<[1], [0], [0], [1], [0, 0, 1, 1], [], []>} : vector<16x4xbf16>, vector<4x256xbf16>, vector<16x256xf32> -> vector<16x256xf32>
    %338 = arith.addf %332, %337 : vector<16x256xf32>
    %339 = vector.extract_strided_slice %298 {offsets = [0, 2], sizes = [4, 256], strides = [1, 1]} : vector<4x290xf32> to vector<4x256xf32>
    %340 = vector.broadcast %323 : vector<1x256xf32> to vector<4x256xf32>
    %341 = arith.mulf %339, %340 : vector<4x256xf32>
    %c2_156 = arith.constant 2 : index
    %c0_157 = arith.constant 0 : index
    %c0_158 = arith.constant 0 : index
    %342 = vector.load %arg8[%c2_156, %c0_157, %c0_158] : memref<9x16x4xbf16, #tpu.memory_space<vmem>>, vector<1x16x4xbf16>
    %343 = vector.shape_cast %342 : vector<1x16x4xbf16> to vector<16x4xbf16>
    %344 = arith.truncf %341 : vector<4x256xf32> to vector<4x256xbf16>
    %cst_159 = arith.constant dense<0.000000e+00> : vector<16x256xf32>
    %345 = tpu.matmul %343, %344, %cst_159 {dimension_numbers = #tpu.dot_dimension_numbers<[1], [0], [0], [1], [0, 0, 1, 1], [], []>} : vector<16x4xbf16>, vector<4x256xbf16>, vector<16x256xf32> -> vector<16x256xf32>
    %346 = arith.addf %338, %345 : vector<16x256xf32>
    %347 = vector.extract_strided_slice %298 {offsets = [0, 16], sizes = [4, 256], strides = [1, 1]} : vector<4x290xf32> to vector<4x256xf32>
    %348 = vector.broadcast %319 : vector<1x256xf32> to vector<4x256xf32>
    %349 = arith.mulf %347, %348 : vector<4x256xf32>
    %c3_160 = arith.constant 3 : index
    %c0_161 = arith.constant 0 : index
    %c0_162 = arith.constant 0 : index
    %350 = vector.load %arg8[%c3_160, %c0_161, %c0_162] : memref<9x16x4xbf16, #tpu.memory_space<vmem>>, vector<1x16x4xbf16>
    %351 = vector.shape_cast %350 : vector<1x16x4xbf16> to vector<16x4xbf16>
    %352 = arith.truncf %349 : vector<4x256xf32> to vector<4x256xbf16>
    %cst_163 = arith.constant dense<0.000000e+00> : vector<16x256xf32>
    %353 = tpu.matmul %351, %352, %cst_163 {dimension_numbers = #tpu.dot_dimension_numbers<[1], [0], [0], [1], [0, 0, 1, 1], [], []>} : vector<16x4xbf16>, vector<4x256xbf16>, vector<16x256xf32> -> vector<16x256xf32>
    %354 = arith.addf %346, %353 : vector<16x256xf32>
    %355 = vector.extract_strided_slice %298 {offsets = [0, 17], sizes = [4, 256], strides = [1, 1]} : vector<4x290xf32> to vector<4x256xf32>
    %c4_164 = arith.constant 4 : index
    %c0_165 = arith.constant 0 : index
    %c0_166 = arith.constant 0 : index
    %356 = vector.load %arg8[%c4_164, %c0_165, %c0_166] : memref<9x16x4xbf16, #tpu.memory_space<vmem>>, vector<1x16x4xbf16>
    %357 = vector.shape_cast %356 : vector<1x16x4xbf16> to vector<16x4xbf16>
    %358 = arith.truncf %355 : vector<4x256xf32> to vector<4x256xbf16>
    %cst_167 = arith.constant dense<0.000000e+00> : vector<16x256xf32>
    %359 = tpu.matmul %357, %358, %cst_167 {dimension_numbers = #tpu.dot_dimension_numbers<[1], [0], [0], [1], [0, 0, 1, 1], [], []>} : vector<16x4xbf16>, vector<4x256xbf16>, vector<16x256xf32> -> vector<16x256xf32>
    %360 = arith.addf %354, %359 : vector<16x256xf32>
    %361 = vector.extract_strided_slice %298 {offsets = [0, 18], sizes = [4, 256], strides = [1, 1]} : vector<4x290xf32> to vector<4x256xf32>
    %362 = vector.broadcast %323 : vector<1x256xf32> to vector<4x256xf32>
    %363 = arith.mulf %361, %362 : vector<4x256xf32>
    %c5_168 = arith.constant 5 : index
    %c0_169 = arith.constant 0 : index
    %c0_170 = arith.constant 0 : index
    %364 = vector.load %arg8[%c5_168, %c0_169, %c0_170] : memref<9x16x4xbf16, #tpu.memory_space<vmem>>, vector<1x16x4xbf16>
    %365 = vector.shape_cast %364 : vector<1x16x4xbf16> to vector<16x4xbf16>
    %366 = arith.truncf %363 : vector<4x256xf32> to vector<4x256xbf16>
    %cst_171 = arith.constant dense<0.000000e+00> : vector<16x256xf32>
    %367 = tpu.matmul %365, %366, %cst_171 {dimension_numbers = #tpu.dot_dimension_numbers<[1], [0], [0], [1], [0, 0, 1, 1], [], []>} : vector<16x4xbf16>, vector<4x256xbf16>, vector<16x256xf32> -> vector<16x256xf32>
    %368 = arith.addf %360, %367 : vector<16x256xf32>
    %369 = vector.extract_strided_slice %298 {offsets = [0, 32], sizes = [4, 256], strides = [1, 1]} : vector<4x290xf32> to vector<4x256xf32>
    %370 = vector.broadcast %319 : vector<1x256xf32> to vector<4x256xf32>
    %371 = arith.mulf %369, %370 : vector<4x256xf32>
    %c6_172 = arith.constant 6 : index
    %c0_173 = arith.constant 0 : index
    %c0_174 = arith.constant 0 : index
    %372 = vector.load %arg8[%c6_172, %c0_173, %c0_174] : memref<9x16x4xbf16, #tpu.memory_space<vmem>>, vector<1x16x4xbf16>
    %373 = vector.shape_cast %372 : vector<1x16x4xbf16> to vector<16x4xbf16>
    %374 = arith.truncf %371 : vector<4x256xf32> to vector<4x256xbf16>
    %cst_175 = arith.constant dense<0.000000e+00> : vector<16x256xf32>
    %375 = tpu.matmul %373, %374, %cst_175 {dimension_numbers = #tpu.dot_dimension_numbers<[1], [0], [0], [1], [0, 0, 1, 1], [], []>} : vector<16x4xbf16>, vector<4x256xbf16>, vector<16x256xf32> -> vector<16x256xf32>
    %376 = arith.addf %368, %375 : vector<16x256xf32>
    %377 = vector.extract_strided_slice %298 {offsets = [0, 33], sizes = [4, 256], strides = [1, 1]} : vector<4x290xf32> to vector<4x256xf32>
    %c7_176 = arith.constant 7 : index
    %c0_177 = arith.constant 0 : index
    %c0_178 = arith.constant 0 : index
    %378 = vector.load %arg8[%c7_176, %c0_177, %c0_178] : memref<9x16x4xbf16, #tpu.memory_space<vmem>>, vector<1x16x4xbf16>
    %379 = vector.shape_cast %378 : vector<1x16x4xbf16> to vector<16x4xbf16>
    %380 = arith.truncf %377 : vector<4x256xf32> to vector<4x256xbf16>
    %cst_179 = arith.constant dense<0.000000e+00> : vector<16x256xf32>
    %381 = tpu.matmul %379, %380, %cst_179 {dimension_numbers = #tpu.dot_dimension_numbers<[1], [0], [0], [1], [0, 0, 1, 1], [], []>} : vector<16x4xbf16>, vector<4x256xbf16>, vector<16x256xf32> -> vector<16x256xf32>
    %382 = arith.addf %376, %381 : vector<16x256xf32>
    %383 = vector.extract_strided_slice %298 {offsets = [0, 34], sizes = [4, 256], strides = [1, 1]} : vector<4x290xf32> to vector<4x256xf32>
    %384 = vector.broadcast %323 : vector<1x256xf32> to vector<4x256xf32>
    %385 = arith.mulf %383, %384 : vector<4x256xf32>
    %c8_180 = arith.constant 8 : index
    %c0_181 = arith.constant 0 : index
    %c0_182 = arith.constant 0 : index
    %386 = vector.load %arg8[%c8_180, %c0_181, %c0_182] : memref<9x16x4xbf16, #tpu.memory_space<vmem>>, vector<1x16x4xbf16>
    %387 = vector.shape_cast %386 : vector<1x16x4xbf16> to vector<16x4xbf16>
    %388 = arith.truncf %385 : vector<4x256xf32> to vector<4x256xbf16>
    %cst_183 = arith.constant dense<0.000000e+00> : vector<16x256xf32>
    %389 = tpu.matmul %387, %388, %cst_183 {dimension_numbers = #tpu.dot_dimension_numbers<[1], [0], [0], [1], [0, 0, 1, 1], [], []>} : vector<16x4xbf16>, vector<4x256xbf16>, vector<16x256xf32> -> vector<16x256xf32>
    %390 = arith.addf %382, %389 : vector<16x256xf32>
    %391 = arith.addf %296, %390 : vector<16x256xf32>
    %c0_184 = arith.constant 0 : index
    %c0_185 = arith.constant 0 : index
    %392 = vector.load %arg9[%c0_184, %c0_185] : memref<16x1xf32, #tpu.memory_space<vmem>>, vector<16x1xf32>
    %393 = vector.broadcast %392 : vector<16x1xf32> to vector<16x256xf32>
    %394 = arith.addf %391, %393 : vector<16x256xf32>
    %cst_186 = arith.constant 0.000000e+00 : f32
    %395 = vector.broadcast %cst_186 : f32 to vector<16x256xf32>
    %396 = arith.maximumf %394, %395 : vector<16x256xf32>
    %c0_187 = arith.constant 0 : index
    %c0_188 = arith.constant 0 : index
    %397 = vector.load %arg10[%c0_187, %c0_188] : memref<8x16xf32, #tpu.memory_space<vmem>>, vector<8x16xf32>
    %cst_189 = arith.constant dense<0.000000e+00> : vector<8x256xf32>
    %398 = tpu.matmul %397, %396, %cst_189 {dimension_numbers = #tpu.dot_dimension_numbers<[1], [0], [0], [1], [0, 0, 1, 1], [], []>} : vector<8x16xf32>, vector<16x256xf32>, vector<8x256xf32> -> vector<8x256xf32>
    %cst_190 = arith.constant dense<0.000000e+00> : vector<8xf32>
    %399 = vector.multi_reduction <add>, %398, %cst_190 [1] : vector<8x256xf32> to vector<8xf32>
    %400 = vector.shape_cast %399 : vector<8xf32> to vector<8x1xf32>
    %cst_191 = arith.constant 3.906250e-03 : f32
    %401 = vector.broadcast %cst_191 : f32 to vector<8x1xf32>
    %402 = arith.mulf %400, %401 : vector<8x1xf32>
    %c0_192 = arith.constant 0 : index
    %c0_193 = arith.constant 0 : index
    %403 = vector.load %arg11[%c0_192, %c0_193] : memref<8x1xf32, #tpu.memory_space<vmem>>, vector<8x1xf32>
    %404 = arith.addf %402, %403 : vector<8x1xf32>
    %c0_194 = arith.constant 0 : index
    %c0_195 = arith.constant 0 : index
    %c0_196 = arith.constant 0 : index
    %405 = vector.load %arg13[%c0_194, %c0_195, %c0_196] : memref<1x8x1xf32, #tpu.memory_space<vmem>>, vector<1x8x1xf32>
    %406 = vector.shape_cast %405 : vector<1x8x1xf32> to vector<8x1xf32>
    %407 = vector.shape_cast %404 : vector<8x1xf32> to vector<1x8x1xf32>
    tpu.vector_store %arg13[%c0_194, %c0_195, %c0_196], %407 {strides = array<i32>} : memref<1x8x1xf32, #tpu.memory_space<vmem>>, vector<1x8x1xf32>,
    return
  }
  func.func @transform_0(%arg0: i32) -> (i32, i32, i32) {
    %c0_i32 = arith.constant 0 : i32
    %c0_i32_0 = arith.constant 0 : i32
    %c0_i32_1 = arith.constant 0 : i32
    return %arg0, %c0_i32, %c0_i32_0 : i32, i32, i32
  }
  func.func @transform_1(%arg0: i32) -> (i32, i32, i32) {
    %c0_i32 = arith.constant 0 : i32
    %c0_i32_0 = arith.constant 0 : i32
    %c0_i32_1 = arith.constant 0 : i32
    return %arg0, %c0_i32, %c0_i32_0 : i32, i32, i32
  }
  func.func @transform_2(%arg0: i32) -> (i32, i32, i32) {
    %c0_i32 = arith.constant 0 : i32
    %c0_i32_0 = arith.constant 0 : i32
    %c0_i32_1 = arith.constant 0 : i32
    %c0_i32_2 = arith.constant 0 : i32
    return %c0_i32, %c0_i32_0, %c0_i32_1 : i32, i32, i32
  }
  func.func @transform_3(%arg0: i32) -> (i32, i32) {
    %c0_i32 = arith.constant 0 : i32
    %c0_i32_0 = arith.constant 0 : i32
    %c0_i32_1 = arith.constant 0 : i32
    return %c0_i32, %c0_i32_0 : i32, i32
  }
  func.func @transform_4(%arg0: i32) -> (i32, i32, i32) {
    %c0_i32 = arith.constant 0 : i32
    %c0_i32_0 = arith.constant 0 : i32
    %c0_i32_1 = arith.constant 0 : i32
    %c0_i32_2 = arith.constant 0 : i32
    return %c0_i32, %c0_i32_0, %c0_i32_1 : i32, i32, i32
  }
  func.func @transform_5(%arg0: i32) -> (i32, i32) {
    %c0_i32 = arith.constant 0 : i32
    %c0_i32_0 = arith.constant 0 : i32
    %c0_i32_1 = arith.constant 0 : i32
    return %c0_i32, %c0_i32_0 : i32, i32
  }
  func.func @transform_6(%arg0: i32) -> (i32, i32, i32) {
    %c0_i32 = arith.constant 0 : i32
    %c0_i32_0 = arith.constant 0 : i32
    %c0_i32_1 = arith.constant 0 : i32
    %c0_i32_2 = arith.constant 0 : i32
    return %c0_i32, %c0_i32_0, %c0_i32_1 : i32, i32, i32
  }
  func.func @transform_7(%arg0: i32) -> (i32, i32, i32) {
    %c0_i32 = arith.constant 0 : i32
    %c0_i32_0 = arith.constant 0 : i32
    %c0_i32_1 = arith.constant 0 : i32
    %c0_i32_2 = arith.constant 0 : i32
    return %c0_i32, %c0_i32_0, %c0_i32_1 : i32, i32, i32
  }
  func.func @transform_8(%arg0: i32) -> (i32, i32) {
    %c0_i32 = arith.constant 0 : i32
    %c0_i32_0 = arith.constant 0 : i32
    %c0_i32_1 = arith.constant 0 : i32
    return %c0_i32, %c0_i32_0 : i32, i32
  }
  func.func @transform_9(%arg0: i32) -> (i32, i32) {
    %c0_i32 = arith.constant 0 : i32
    %c0_i32_0 = arith.constant 0 : i32
    %c0_i32_1 = arith.constant 0 : i32
    return %c0_i32, %c0_i32_0 : i32, i32
  }
  func.func @transform_10(%arg0: i32) -> (i32, i32) {
    %c0_i32 = arith.constant 0 : i32
    %c0_i32_0 = arith.constant 0 : i32
    %c0_i32_1 = arith.constant 0 : i32
    return %c0_i32, %c0_i32_0 : i32, i32
  }
  func.func @transform_11(%arg0: i32) -> (i32, i32, i32) {
    %c0_i32 = arith.constant 0 : i32
    %c0_i32_0 = arith.constant 0 : i32
    %c0_i32_1 = arith.constant 0 : i32
    return %arg0, %c0_i32, %c0_i32_0 : i32, i32, i32
  }
  func.func @transform_12(%arg0: i32) -> (i32, i32, i32) {
    %c0_i32 = arith.constant 0 : i32
    %c0_i32_0 = arith.constant 0 : i32
    %c0_i32_1 = arith.constant 0 : i32
    return %arg0, %c0_i32, %c0_i32_0 : i32, i32, i32
  }
}

</mosaic_0001>

<bundles_post_ra>
// kernel: sshnet_forward.1
= control target key start
LH: loop header
LB: loop body
LE: loop exit
PB: predicated region body
PF: predicated region fallthrough
CT: control target
= control target key end

     0   :  { %s3715_s21 = smov 0   ;;  %s4534_s0 = inlined_call_operand.vmem [shape: f32[2,4,256], index: 0, kind: input, shape index: {}]   ;;  %s4535_s1 = inlined_call_operand.vmem [shape: f32[2,4,256], index: 1, kind: input, shape index: {}]   ;;  %s4536_s2 = inlined_call_operand.vmem [shape: bf16[9,8,4], index: 2, kind: input, shape index: {}]   ;;  %s4537_s3 = inlined_call_operand.vmem [shape: f32[8,1], index: 3, kind: input, shape index: {}]   ;;  %s4538_s4 = inlined_call_operand.vmem [shape: bf16[9,4,8], index: 4, kind: input, shape index: {}]   ;;  %s4539_s5 = inlined_call_operand.vmem [shape: f32[4,1], index: 5, kind: input, shape index: {}]   ;;  %s4540_s6 = inlined_call_operand.vmem [shape: bf16[9,16,4], index: 6, kind: input, shape index: {}]   ;;  %s4541_s7 = inlined_call_operand.vmem [shape: bf16[9,16,4], index: 7, kind: input, shape index: {}]   ;;  %s4542_s8 = inlined_call_operand.vmem [shape: f32[16,1], index: 8, kind: input, shape index: {}]   ;;  %s4543_s9 = inlined_call_operand.vmem [shape: f32[8,16], index: 9, kind: input, shape index: {}]   ;;  %s4544_s10 = inlined_call_operand.vmem [shape: f32[8,1], index: 10, kind: input, shape index: {}]   ;;  %s4545_s11 = inlined_call_operand.vmem [shape: f32[2,4,256], index: 11, kind: output, shape index: {0}]   ;;  %s4546_s12 = inlined_call_operand.vmem [shape: f32[2,8,1], index: 12, kind: output, shape index: {1}]  }
   0x1 LB: > { %s3395_s22 = sadd.s32 4294967295, %s3632_s21   ;;  %p3399_p0 = scmp.ge.s32.totalorder %s3632_s21, 1  ;;  %s3632_s21 = sphi %s3715_s21, %s23_s21  }
   0x2   : > { %p375_p1 = scmp.lt.s32.totalorder %s3632_s21, 3 }
   0x4   : > { %p376_p2 = pnand %p3399_p0, %p375_p1 }
   0x6   : > { %379 = sbr.rel (%p376_p2) target bundleno = 1871 (0x74f), region = 64 }
   0xb   : > { %p426_p3 = scmp.lt.s32.totalorder %s3395_s22, 1  ;;  %v461_v0 = vlaneseq  ;;  %s3634_s27 = smov 17   ;;  %v3635_v7 = vmov 0.0   ;;  %vm454_vm4 = vcmask 138240   ;;  %v3641_v18 = vmov 0  }
   0xc   : > { %s3636_s28 = smov 2   ;;  %s3637_s29 = smov 18   ;;  %565 = vmatprep.mubr.bf16.mxu0 %v3641_v18  ;;  %615 = vmatprep.mubr.bf16.mxu1 %v3641_v18  ;;  %vm526_vm5 = vcmask 1041408   ;;  %v502_v36 = vld [vmem:[%s4536_s2] sm:$0xf]  ;;  %vm522_vm6 = vcmask 31744  }
   0xd   : > { %s4568_s22 = smov (!%p426_p3, %s3395_s22), 1  ;;  %v462_v1 = vand.u32 127, %v461_v0  ;;  %s3638_s30 = smov 16   ;;  %3604 = vset.pattern.permute.xlu1 %v3641_v18  ;;  %3605 = vset.pattern.permute.xlu0 %v3641_v18  ;;  %vm630_vm7 = vcmask 15360   ;;  %vm713_vm8 = vcmask 130048   ;;  %vm857_vm9 = vcmask 146432  }
   0xe   : > { %s3723_s23 = sshll.u32 %s4568_s22, 3  ;;  %s3639_s13 = smov 34   ;;  %vm938_vm10 = vcmask 261120   ;;  %vm1082_vm11 = vcmask 277504   ;;  %vm519_vm12 = vcmask 1039360   ;;  %vm652_vm13 = vcmask 1031168  }
   0xf   : > { %v463_v2 = vadd.s32 128, %v462_v1  ;;  %v468_v3 = vand.u32 15, %v462_v1  ;;  %s430_s26 = scalar_lea.vmem %s4534_s0, %s3723_s23  ;;  %s3640_s14 = smov 32   ;;  %vm735_vm14 = vcmask 916480   ;;  %vm798_vm15 = vcmask 908288  }
  0x10   : > { %v446_v4 = vld [vmem:[%s430_s26] sm:$0xff]  ;;  %s3642_s15 = smov 127   ;;  %s3643_s16 = smov 111  }
  0x11   : > { %v475_v5 = vand.u32 15, %v463_v2  ;;  %vm488_vm0 = vcmp.ge.s32.totalorder %v468_v3, 1  ;;  %vm494_vm1 = vcmp.le.s32.totalorder %v468_v3, 14  ;;  %450 = vrot.lane.b32.xlu0 %v446_v4, %s3634_s27  ;;  %v449_v6 = vcombine.high %v446_v4, %v446_v4  ;;  %s3644_s17 = smov 126   ;;  %s3645_s20 = smov 112  }
  0x12   : > { %v3731_v8 = vsel %vm488_vm0, 1.0, %v3635_v7  ;;  %v3409_v9 = vsel %vm494_vm1, 1.0, %v3635_v7  ;;  %s3646_s22 = smov 96   ;;  %s3647_s24 = smov 110   ;;  %vm879_vm0 = vcmask 900096   ;;  %vm960_vm1 = vcmask 785408  }
  0x13   : > { %vm495_vm2 = vcmp.le.s32.totalorder %v475_v5, 14  ;;  %vm489_vm3 = vcmp.ge.s32.totalorder %v475_v5, 1  ;;  %s3648_s25 = smov 95   ;;  %s3649_s26 = smov 94  }
  0x14   : > { %v3410_v10 = vsel %vm495_vm2, 1.0, %v3635_v7  ;;  %v3736_v11 = vsel %vm489_vm3, 1.0, %v3635_v7  ;;  %vm1023_vm2 = vcmask 777216   ;;  %vm1104_vm3 = vcmask 769024  }
  0x15   : > { %v3579_v12 = vpack.i.bf16 %v3410_v10, %v3409_v9  ;;  %452 = vrot.lane.b32.xlu0 %v449_v6, %s3634_s27  ;;  %v3584_v13 = vpack.i.bf16 %v3736_v11, %v3731_v8 }
  0x17   : > { %3580 = vrot.lane.b32.xlu1 %v3579_v12, %s3636_s28  ;;  %s444_s28 = scalar_lea.vmem %s4546_s12, %s3723_s23 }
  0x19   : > { %3590 = vrot.lane.b32.xlu0 %v3579_v12, %s3637_s29  ;;  %s440_s29 = scalar_lea.vmem %s4545_s11, %s3723_s23 }
  0x1b   : > { %3585 = vrot.lane.b32.xlu1 %v3584_v13, %s3638_s30 }
  0x1d   : > { %3600 = vrot.lane.b32.xlu0 %v3579_v12, %s3639_s13  ;;  %s435_s13 = scalar_lea.vmem %s4535_s1, %s3723_s23 }
  0x1f   : > { %3595 = vrot.lane.b32.xlu1 %v3584_v13, %s3640_s14 }
  0x83   : > { %v451_v14 = vpop.permute.xlu0 %450 }
  0x84   : > { %v3742_v15 = vsel %vm454_vm4, 0.0, %v451_v14 }
  0x85   : > { %v3746_v16 = vpack.c.bf16 %v3742_v15, %v3742_v15  ;;  %v500_v17 = vmul.f32 %v3731_v8, %v3742_v15 }
  0x87   : > { %513 = vrot.lane.b32.xlu1 %v3746_v16, %s3642_s15  ;;  %792 = vrot.lane.b32.xlu0 %v3746_v16, %s3643_s16  ;;  %v453_v19 = vpop.permute.xlu0 %452  ;;  %v503_v23 = vpack.c.bf16 %v500_v17, %v500_v17 }
  0x88   : > { %v3757_v20 = vsel %vm454_vm4, %v451_v14, %v453_v19  ;;  %v3760_v21 = vsel %vm454_vm4, %v453_v19, 0.0  ;;  %v1159_v19 = vld [vmem:[%s4537_s3] sm:$0xff] }
  0x89   : > { %v3581_v22 = vpop.permute.xlu1 %3580  ;;  %v3768_v25 = vpack.c.bf16 %v3760_v21, %v3760_v21  ;;  %v3772_v26 = vpack.c.bf16 %v3757_v20, %v3757_v20  ;;  %v501_v27 = vmul.f32 %v3736_v11, %v3757_v20  ;;  %v578_v31 = vsel %vm526_vm5, %v503_v23, 0 }
  0x8a   : > { %v3764_v24 = vunpack.i.l.bf16 %v3581_v22  ;;  %v3783_v32 = vunpack.i.h.bf16 %v3581_v22 }
  0x8b   : > { %517 = vrot.lane.b32.xlu1 %v3768_v25, %s3642_s15  ;;  %515 = vrot.lane.b32.xlu0 %v3772_v26, %s3642_s15  ;;  %v504_v30 = vpack.c.bf16 %v501_v27, %v501_v27  ;;  %v3591_v42 = vpop.permute.xlu0 %3590 }
  0x8c   : > { %v635_v28 = vmul.f32 %v3764_v24, %v3742_v15  ;;  %v637_v41 = vmul.f32 %v3783_v32, %v3760_v21  ;;  %v3811_v46 = vsel %vm630_vm7, %v3764_v24, %v3783_v32  ;;  %v3821_v48 = vunpack.i.l.bf16 %v3591_v42 }
  0x8d   : > { %v3586_v29 = vpop.permute.xlu1 %3585  ;;  %3414 = vmatprep.subr.msk.bf16.mxu1 %vm526_vm5, %v504_v30  ;;  %v636_v49 = vmul.f32 %v3811_v46, %v3757_v20  ;;  %v3829_v54 = vunpack.i.h.bf16 %v3591_v42  ;;  %vm1206_vm7 = vcmask 1043456  }
  0x8e   : > { %v3785_v33 = vunpack.i.l.bf16 %v3586_v29  ;;  %v640_v34 = vpack.c.bf16 %v635_v28, %v635_v28  ;;  %598 = vmatpush1.bf16.msra.mxu1 %v578_v31  ;;  %v3794_v38 = vunpack.i.h.bf16 %v3586_v29  ;;  %v642_v43 = vpack.c.bf16 %v637_v41, %v637_v41  ;;  %v3411_v28 = vld [vmem:[%s4536_s2 + $0x4] sm:$0xf] }
  0x8f   : > { %v641_v55 = vpack.c.bf16 %v636_v49, %v636_v49  ;;  %v862_v58 = vmul.f32 %v3821_v48, %v3742_v15  ;;  %v3839_v59 = vsel %vm857_vm9, %v3821_v48, %v3829_v54  ;;  %v864_v62 = vmul.f32 %v3829_v54, %v3760_v21  ;;  %v3601_v0 = vpop.permute.xlu0 %3600 }
  0x90   : > { %646 = vrot.lane.b32.xlu0 %v640_v34, %s3644_s17  ;;  %v718_v35 = vmul.f32 %v3785_v33, %v3742_v15  ;;  %v720_v44 = vmul.f32 %v3794_v38, %v3760_v21  ;;  %v3816_v47 = vsel %vm713_vm8, %v3785_v33, %v3794_v38  ;;  %v863_v63 = vmul.f32 %v3839_v59, %v3757_v20 }
  0x91   : > { %v3596_v37 = vpop.permute.xlu1 %3595  ;;  %3415 = vmatmul.mubr.msk.bf16.vlgmr.msra.gmra.mxu1 %vm522_vm6, %v502_v36  ;;  %v719_v53 = vmul.f32 %v3816_v47, %v3757_v20  ;;  %v867_v61 = vpack.c.bf16 %v862_v58, %v862_v58  ;;  %v3849_v1 = vunpack.i.l.bf16 %v3601_v0  ;;  %v869_v2 = vpack.c.bf16 %v864_v62, %v864_v62 }
  0x92   : > { %v3796_v39 = vunpack.i.l.bf16 %v3596_v37  ;;  %v723_v40 = vpack.c.bf16 %v718_v35, %v718_v35  ;;  %779 = vmatprep.mubr.bf16.mxu1 %v3641_v18  ;;  %v3825_v50 = vunpack.i.h.bf16 %v3596_v37  ;;  %v725_v51 = vpack.c.bf16 %v720_v44, %v720_v44 }
  0x93   : > { %v724_v56 = vpack.c.bf16 %v719_v53, %v719_v53  ;;  %v868_v3 = vpack.c.bf16 %v863_v63, %v863_v63  ;;  %v3857_v5 = vunpack.i.h.bf16 %v3601_v0  ;;  %v1087_v9 = vmul.f32 %v3849_v1, %v3742_v15 }
  0x94   : > { %729 = vrot.lane.b32.xlu1 %v723_v40, %s3645_s20  ;;  %796 = vrot.lane.b32.xlu0 %v3768_v25, %s3643_s16  ;;  %v943_v45 = vmul.f32 %v3796_v39, %v3742_v15  ;;  %v945_v57 = vmul.f32 %v3825_v50, %v3760_v21  ;;  %v3853_v4 = vsel %vm938_vm10, %v3796_v39, %v3825_v50  ;;  %vm1202_vm9 = vcmask 64512  }
  0x95   : > { %v944_v6 = vmul.f32 %v3853_v4, %v3757_v20  ;;  %v1092_v12 = vpack.c.bf16 %v1087_v9, %v1087_v9  ;;  %v1089_v13 = vmul.f32 %v3857_v5, %v3760_v21  ;;  %v3871_v14 = vsel %vm1082_vm11, %v3849_v1, %v3857_v5 }
  0x96   : > { %v948_v52 = vpack.c.bf16 %v943_v45, %v943_v45  ;;  %v950_v60 = vpack.c.bf16 %v945_v57, %v945_v57 }
  0x97   : > { %v949_v10 = vpack.c.bf16 %v944_v6, %v944_v6  ;;  %v1094_v15 = vpack.c.bf16 %v1089_v13, %v1089_v13  ;;  %v3425_v6 = vld [vmem:[%s4536_s2 + $0x14] sm:$0xf] }
  0x98   : > { %794 = vrot.lane.b32.xlu1 %v3772_v26, %s3643_s16  ;;  %650 = vrot.lane.b32.xlu0 %v642_v43, %s3644_s17 }
  0x9c   : > { %733 = vrot.lane.b32.xlu1 %v725_v51, %s3645_s20  ;;  %954 = vrot.lane.b32.xlu0 %v948_v52, %s3646_s22 }
  0xa0   : > { %648 = vrot.lane.b32.xlu1 %v641_v55, %s3644_s17  ;;  %731 = vrot.lane.b32.xlu0 %v724_v56, %s3645_s20  ;;  %v3416_v55 = vld [vmem:[%s4536_s2 + $0x8] sm:$0xf]  ;;  %v3419_v56 = vld [vmem:[%s4536_s2 + $0xc] sm:$0xf] }
  0xa4   : > { %958 = vrot.lane.b32.xlu0 %v950_v60, %s3646_s22  ;;  %873 = vrot.lane.b32.xlu1 %v867_v61, %s3647_s24 }
  0xa8   : > { %877 = vrot.lane.b32.xlu1 %v869_v2, %s3647_s24  ;;  %875 = vrot.lane.b32.xlu0 %v868_v3, %s3647_s24  ;;  %v3422_v3 = vld [vmem:[%s4536_s2 + $0x10] sm:$0xf] }
  0xac   : > { %1017 = vrot.lane.b32.xlu1 %v3746_v16, %s3648_s25  ;;  %1019 = vrot.lane.b32.xlu0 %v3772_v26, %s3648_s25  ;;  %v1088_v16 = vmul.f32 %v3871_v14, %v3757_v20 }
  0xae   : > { %v1093_v17 = vpack.c.bf16 %v1088_v16, %v1088_v16 }
  0xb0   : > { %956 = vrot.lane.b32.xlu1 %v949_v10, %s3646_s22  ;;  %1098 = vrot.lane.b32.xlu0 %v1092_v12, %s3649_s26 }
  0xb4   : > { %1021 = vrot.lane.b32.xlu1 %v3768_v25, %s3648_s25  ;;  %1102 = vrot.lane.b32.xlu0 %v1094_v15, %s3649_s26 }
  0xb8   : > { %1100 = vrot.lane.b32.xlu1 %v1093_v17, %s3649_s26 }
  0xbc   : > { %1162 = vperm.xlu1 %3604, %v1159_v19  }
  0xf9   : > { %v514_v21 = vpop.permute.xlu1 %513  ;;  %v793_v22 = vpop.permute.xlu0 %792 }
  0xfd   : > { %v518_v23 = vpop.permute.xlu1 %517  ;;  %v516_v26 = vpop.permute.xlu0 %515 }
  0xfe   : > { %v521_v20 = vsel %vm519_vm12, %v516_v26, %v518_v23  ;;  %v520_v27 = vsel %vm519_vm12, %v514_v21, %v516_v26  ;;  %v3428_v21 = vld [vmem:[%s4536_s2 + $0x18] sm:$0xf] }
  0xff   : > { %3412 = vmatprep.subr.msk.bf16.mxu0 %vm526_vm5, %v521_v20  ;;  %v528_v25 = vsel %vm526_vm5, %v520_v27, 0  ;;  %v3431_v20 = vld [vmem:[%s4536_s2 + $0x1c] sm:$0xf] }
 0x100   : > { %548 = vmatpush1.bf16.msra.mxu0 %v528_v25 }
 0x102   : > { %v647_v29 = vpop.permute.xlu0 %646 }
 0x103   : > { %3413 = vmatmul.mubr.msk.bf16.vlgmr.msra.gmra.mxu0 %vm522_vm6, %v3411_v28 }
 0x104   : > { %696 = vmatprep.mubr.bf16.mxu0 %v3641_v18 }
 0x106   : > { %v730_v30 = vpop.permute.xlu1 %729  ;;  %v797_v31 = vpop.permute.xlu0 %796 }
 0x10a   : > { %v795_v34 = vpop.permute.xlu1 %794  ;;  %v651_v35 = vpop.permute.xlu0 %650 }
 0x10b   : > { %v799_v52 = vsel %vm798_vm15, %v793_v22, %v795_v34  ;;  %v800_v53 = vsel %vm798_vm15, %v795_v34, %v797_v31  ;;  %v3434_v31 = vld [vmem:[%s4536_s2 + $0x20] sm:$0xf] }
 0x10c   : > { %v805_v60 = vsel %vm526_vm5, %v799_v52, 0 }
 0x10e   : > { %v734_v36 = vpop.permute.xlu1 %733  ;;  %v955_v37 = vpop.permute.xlu0 %954 }
 0x112   : > { %v649_v40 = vpop.permute.xlu1 %648  ;;  %v732_v41 = vpop.permute.xlu0 %731 }
 0x113   : > { %v653_v42 = vsel %vm652_vm13, %v647_v29, %v649_v40  ;;  %v654_v43 = vsel %vm652_vm13, %v649_v40, %v651_v35  ;;  %v736_v44 = vsel %vm735_vm14, %v730_v30, %v732_v41  ;;  %v737_v45 = vsel %vm735_vm14, %v732_v41, %v734_v36 }
 0x114   : > { %v659_v49 = vsel %vm526_vm5, %v653_v42, 0  ;;  %v742_v51 = vsel %vm526_vm5, %v736_v44, 0  ;;  %3417 = vmatprep.subr.msk.bf16.mxu0 %vm526_vm5, %v654_v43  ;;  %3420 = vmatprep.subr.msk.bf16.mxu1 %vm526_vm5, %v737_v45 }
 0x115   : > { %679 = vmatpush1.bf16.msra.mxu0 %v659_v49  ;;  %762 = vmatpush1.bf16.msra.mxu1 %v742_v51 }
 0x116   : > { %3423 = vmatprep.subr.msk.bf16.mxu0 %vm526_vm5, %v800_v53  ;;  %v959_v57 = vpop.permute.xlu0 %958  ;;  %v874_v58 = vpop.permute.xlu1 %873 }
 0x118   : > { %3418 = vmatmul.mubr.msk.bf16.vlgmr.msra.gmra.mxu0 %vm522_vm6, %v3416_v55  ;;  %3421 = vmatmul.mubr.msk.bf16.vlgmr.msra.gmra.mxu1 %vm522_vm6, %v3419_v56 }
 0x119   : > { %825 = vmatpush1.bf16.msra.mxu0 %v805_v60  ;;  %842 = vmatprep.mubr.bf16.mxu0 %v3641_v18 }
 0x11a   : > { %v878_v61 = vpop.permute.xlu1 %877  ;;  %v876_v62 = vpop.permute.xlu0 %875  ;;  %923 = vmatprep.mubr.bf16.mxu1 %v3641_v18 }
 0x11b   : > { %v880_v63 = vsel %vm879_vm0, %v874_v58, %v876_v62  ;;  %v881_v0 = vsel %vm879_vm0, %v876_v62, %v878_v61 }
 0x11c   : > { %v886_v2 = vsel %vm526_vm5, %v880_v63, 0  ;;  %3426 = vmatprep.subr.msk.bf16.mxu1 %vm526_vm5, %v881_v0 }
 0x11d   : > { %906 = vmatpush1.bf16.msra.mxu1 %v886_v2 }
 0x11e   : > { %v1018_v9 = vpop.permute.xlu1 %1017  ;;  %v1020_v10 = vpop.permute.xlu0 %1019 }
 0x11f   : > { %v1024_v19 = vsel %vm1023_vm2, %v1018_v9, %v1020_v10 }
 0x120   : > { %3424 = vmatmul.mubr.msk.bf16.vlgmr.msra.gmra.mxu0 %vm522_vm6, %v3422_v3  ;;  %3427 = vmatmul.mubr.msk.bf16.vlgmr.msra.gmra.mxu1 %vm522_vm6, %v3425_v6  ;;  %v1030_v26 = vsel %vm526_vm5, %v1024_v19, 0 }
 0x121   : > { %1004 = vmatprep.mubr.bf16.mxu0 %v3641_v18  ;;  %1067 = vmatprep.mubr.bf16.mxu1 %v3641_v18 }
 0x122   : > { %v957_v12 = vpop.permute.xlu1 %956  ;;  %v1099_v17 = vpop.permute.xlu0 %1098 }
 0x123   : > { %v961_v13 = vsel %vm960_vm1, %v955_v37, %v957_v12  ;;  %v962_v15 = vsel %vm960_vm1, %v957_v12, %v959_v57 }
 0x124   : > { %v967_v16 = vsel %vm526_vm5, %v961_v13, 0  ;;  %3429 = vmatprep.subr.msk.bf16.mxu0 %vm526_vm5, %v962_v15 }
 0x125   : > { %987 = vmatpush1.bf16.msra.mxu0 %v967_v16 }
 0x126   : > { %v1022_v22 = vpop.permute.xlu1 %1021  ;;  %v1103_v27 = vpop.permute.xlu0 %1102 }
 0x127   : > { %v1025_v23 = vsel %vm1023_vm2, %v1020_v10, %v1022_v22 }
 0x128   : > { %3430 = vmatmul.mubr.msk.bf16.vlgmr.msra.gmra.mxu0 %vm522_vm6, %v3428_v21  ;;  %3432 = vmatprep.subr.msk.bf16.mxu1 %vm526_vm5, %v1025_v23 }
 0x129   : > { %1050 = vmatpush1.bf16.msra.mxu1 %v1030_v26  ;;  %1148 = vmatprep.mubr.bf16.mxu0 %v3641_v18 }
 0x12a   : > { %v1101_v25 = vpop.permute.xlu1 %1100 }
 0x12b   : > { %v1105_v28 = vsel %vm1104_vm3, %v1099_v17, %v1101_v25  ;;  %v1106_v29 = vsel %vm1104_vm3, %v1101_v25, %v1103_v27 }
 0x12c   : > { %v1111_v30 = vsel %vm526_vm5, %v1105_v28, 0  ;;  %3433 = vmatmul.mubr.msk.bf16.vlgmr.msra.gmra.mxu1 %vm522_vm6, %v3431_v20  ;;  %3435 = vmatprep.subr.msk.bf16.mxu0 %vm526_vm5, %v1106_v29 }
 0x12d   : > { %1131 = vmatpush1.bf16.msra.mxu0 %v1111_v30  ;;  %1245 = vmatprep.mubr.bf16.mxu1 %v3641_v18 }
 0x130   : > { %3436 = vmatmul.mubr.msk.bf16.vlgmr.msra.gmra.mxu0 %vm522_vm6, %v3434_v31 }
 0x131   : > { %1295 = vmatprep.mubr.bf16.mxu0 %v3641_v18 }
 0x137   : > { %v1163_v30 = vpop.permute.xlu1 %1162 }
 0x151   : > { %v617_v34 = vpop.f32.mrf.mxu1 }
 0x153   : > { %v619_v35 = vpop.f32.mrf.mxu1 }
 0x155   : > { %v621_v36 = vpop.f32.mrf.mxu1 }
 0x157   : > { %v622_v37 = vpop.f32.mrf.mxu1 }
 0x1c3   : > { %v567_v40 = vpop.f32.mrf.mxu0 }
 0x1c4   : > { %v618_v57 = vadd.f32 %v617_v34, %v567_v40 }
 0x1c5   : > { %v569_v41 = vpop.f32.mrf.mxu0 }
 0x1c6   : > { %v620_v61 = vadd.f32 %v619_v35, %v569_v41 }
 0x1c7   : > { %v571_v42 = vpop.f32.mrf.mxu0 }
 0x1c9   : > { %v572_v43 = vpop.f32.mrf.mxu0 }
 0x1d8   : > { %v698_v44 = vpop.f32.mrf.mxu0  ;;  %v781_v45 = vpop.f32.mrf.mxu1 }
 0x1d9   : > { %v705_v62 = vadd.f32 %v698_v44, %v618_v57 }
 0x1da   : > { %v700_v49 = vpop.f32.mrf.mxu0  ;;  %v783_v51 = vpop.f32.mrf.mxu1 }
 0x1db   : > { %v706_v2 = vadd.f32 %v700_v49, %v620_v61  ;;  %v788_v9 = vadd.f32 %v781_v45, %v705_v62 }
 0x1dc   : > { %v702_v52 = vpop.f32.mrf.mxu0  ;;  %v785_v53 = vpop.f32.mrf.mxu1 }
 0x1dd   : > { %v789_v13 = vadd.f32 %v783_v51, %v706_v2 }
 0x1de   : > { %v703_v55 = vpop.f32.mrf.mxu0  ;;  %v786_v56 = vpop.f32.mrf.mxu1 }
 0x1e0   : > { %v844_v58 = vpop.f32.mrf.mxu0  ;;  %v925_v60 = vpop.f32.mrf.mxu1 }
 0x1e1   : > { %v851_v15 = vadd.f32 %v844_v58, %v788_v9 }
 0x1e2   : > { %v846_v63 = vpop.f32.mrf.mxu0  ;;  %v927_v0 = vpop.f32.mrf.mxu1 }
 0x1e3   : > { %v852_v17 = vadd.f32 %v846_v63, %v789_v13  ;;  %v932_v21 = vadd.f32 %v925_v60, %v851_v15  ;;  %v1183_v13 = vld [vmem:[%s4538_s4] sm:$0x3] }
 0x1e4   : > { %v848_v3 = vpop.f32.mrf.mxu0  ;;  %v929_v6 = vpop.f32.mrf.mxu1 }
 0x1e5   : > { %v933_v26 = vadd.f32 %v927_v0, %v852_v17 }
 0x1e6   : > { %v849_v10 = vpop.f32.mrf.mxu0  ;;  %v930_v12 = vpop.f32.mrf.mxu1 }
 0x1e8   : > { %v1006_v16 = vpop.f32.mrf.mxu0 }
 0x1e9   : > { %v1013_v20 = vadd.f32 %v1006_v16, %v932_v21 }
 0x1ea   : > { %v1008_v19 = vpop.f32.mrf.mxu0 }
 0x1eb   : > { %v1014_v28 = vadd.f32 %v1008_v19, %v933_v26 }
 0x1ec   : > { %v1010_v22 = vpop.f32.mrf.mxu0  ;;  %v1069_v23 = vpop.f32.mrf.mxu1 }
 0x1ed   : > { %v1076_v29 = vadd.f32 %v1069_v23, %v1013_v20 }
 0x1ee   : > { %v1011_v27 = vpop.f32.mrf.mxu0  ;;  %v1071_v25 = vpop.f32.mrf.mxu1 }
 0x1ef   : > { %v1077_v35 = vadd.f32 %v1071_v25, %v1014_v28 }
 0x1f0   : > { %v1073_v31 = vpop.f32.mrf.mxu1  ;;  %v1150_v34 = vpop.f32.mrf.mxu0 }
 0x1f1   : > { %v1157_v36 = vadd.f32 %v1150_v34, %v1076_v29 }
 0x1f2   : > { %v1074_v37 = vpop.f32.mrf.mxu1  ;;  %v1152_v40 = vpop.f32.mrf.mxu0 }
 0x1f3   : > { %v1165_v41 = vadd.f32 %v1163_v30, %v1157_v36  ;;  %v1158_v42 = vadd.f32 %v1152_v40, %v1077_v35 }
 0x1f4   : > { %v1154_v43 = vpop.f32.mrf.mxu0 }
 0x1f5   : > { %v1167_v44 = vmax.f32 %v1165_v41, 0.0  ;;  %v1166_v45 = vadd.f32 %v1163_v30, %v1158_v42 }
 0x1f6   : > { %v1155_v49 = vpop.f32.mrf.mxu0 }
 0x1f7   : > { %v1168_v51 = vmax.f32 %v1166_v45, 0.0  ;;  %1171 = vrot.lane.b32.xlu0 %v1167_v44, %s3634_s27 }
 0x1f9   : > { %1173 = vrot.lane.b32.xlu1 %v1168_v51, %s3634_s27  ;;  %v1783_v51 = vld [vmem:[%s4539_s5] sm:$0xf] }
 0x269   : > { %v1172_v52 = vpop.permute.xlu0 %1171 }
 0x26a   : > { %v1179_v53 = vsel %vm454_vm4, 0.0, %v1172_v52 }
 0x26b   : > { %v1174_v55 = vpop.permute.xlu1 %1173  ;;  %v1188_v56 = vpack.c.bf16 %v1179_v53, %v1179_v53  ;;  %v1181_v57 = vmul.f32 %v3731_v8, %v1179_v53  ;;  %v1375_v63 = vmul.f32 %v3785_v33, %v1179_v53  ;;  %v1304_v6 = vmul.f32 %v3764_v24, %v1179_v53 }
 0x26c   : > { %v1175_v58 = vsel %vm454_vm4, %v1172_v52, %v1174_v55  ;;  %v1180_v60 = vsel %vm454_vm4, %v1174_v55, 0.0  ;;  %v1508_v15 = vmul.f32 %v3821_v48, %v1179_v53  ;;  %v1579_v16 = vmul.f32 %v3796_v39, %v1179_v53  ;;  %v4016_v52 = vld [vmem:[%s435_s13] sm:$0xff] }
 0x26d   : > { %1194 = vrot.lane.b32.xlu0 %v1188_v56, %s3642_s15  ;;  %1448 = vrot.lane.b32.xlu1 %v1188_v56, %s3643_s16  ;;  %v1182_v61 = vmul.f32 %v3736_v11, %v1175_v58  ;;  %v1184_v62 = vpack.c.bf16 %v1181_v57, %v1181_v57  ;;  %v1190_v0 = vpack.c.bf16 %v1180_v60, %v1180_v60 }
 0x26e   : > { %v1189_v2 = vpack.c.bf16 %v1175_v58, %v1175_v58  ;;  %v1380_v10 = vpack.c.bf16 %v1375_v63, %v1375_v63  ;;  %v1309_v12 = vpack.c.bf16 %v1304_v6, %v1304_v6  ;;  %v1513_v17 = vpack.c.bf16 %v1508_v15, %v1508_v15 }
 0x26f   : > { %v1185_v3 = vpack.c.bf16 %v1182_v61, %v1182_v61  ;;  %v1258_v9 = vsel %vm1206_vm7, %v1184_v62, 0  ;;  %v1584_v19 = vpack.c.bf16 %v1579_v16, %v1579_v16  ;;  %v1305_v21 = vmul.f32 %v1175_v58, %v3811_v46  ;;  %v3437_v62 = vld [vmem:[%s4538_s4 + $0x2] sm:$0x3] }
 0x270   : > { %v1306_v22 = vmul.f32 %v3783_v32, %v1180_v60  ;;  %v1377_v20 = vmul.f32 %v3794_v38, %v1180_v60  ;;  %v1376_v27 = vmul.f32 %v1175_v58, %v3816_v47  ;;  %v1510_v29 = vmul.f32 %v3829_v54, %v1180_v60 }
 0x271   : > { %1198 = vrot.lane.b32.xlu0 %v1190_v0, %s3642_s15  ;;  %1196 = vrot.lane.b32.xlu1 %v1189_v2, %s3642_s15  ;;  %v1310_v23 = vpack.c.bf16 %v1305_v21, %v1305_v21  ;;  %v1509_v30 = vmul.f32 %v1175_v58, %v3839_v59  ;;  %v1580_v35 = vmul.f32 %v1175_v58, %v3853_v4  ;;  %v3442_v21 = vld [vmem:[%s4538_s4 + $0x4] sm:$0x3] }
 0x272   : > { %3440 = vmatprep.subr.msk.bf16.mxu0 %vm1206_vm7, %v1185_v3  ;;  %v1311_v26 = vpack.c.bf16 %v1306_v22, %v1306_v22  ;;  %v1382_v25 = vpack.c.bf16 %v1377_v20, %v1377_v20  ;;  %v1381_v28 = vpack.c.bf16 %v1376_v27, %v1376_v27  ;;  %v1515_v31 = vpack.c.bf16 %v1510_v29, %v1510_v29 }
 0x273   : > { %1278 = vmatpush1.bf16.msra.mxu0 %v1258_v9  ;;  %v1514_v34 = vpack.c.bf16 %v1509_v30, %v1509_v30  ;;  %v1581_v36 = vmul.f32 %v3825_v50, %v1180_v60  ;;  %v1585_v37 = vpack.c.bf16 %v1580_v35, %v1580_v35  ;;  %v1712_v41 = vmul.f32 %v3849_v1, %v1179_v53 }
 0x274   : > { %v1713_v43 = vmul.f32 %v1175_v58, %v3871_v14  ;;  %v1714_v44 = vmul.f32 %v3857_v5, %v1180_v60 }
 0x275   : > { %1386 = vrot.lane.b32.xlu0 %v1380_v10, %s3645_s20  ;;  %1315 = vrot.lane.b32.xlu1 %v1309_v12, %s3644_s17  ;;  %v1586_v40 = vpack.c.bf16 %v1581_v36, %v1581_v36  ;;  %v1717_v42 = vpack.c.bf16 %v1712_v41, %v1712_v41  ;;  %v3451_v41 = vld [vmem:[%s4538_s4 + $0xa] sm:$0x3] }
 0x276   : > { %3441 = vmatmul.mubr.msk.bf16.vlgmr.msra.gmra.mxu0 %vm1202_vm9, %v1183_v13  ;;  %v1718_v45 = vpack.c.bf16 %v1713_v43, %v1713_v43  ;;  %v1719_v49 = vpack.c.bf16 %v1714_v44, %v1714_v44 }
 0x277   : > { %1435 = vmatprep.mubr.bf16.mxu0 %v3641_v18 }
 0x279   : > { %1450 = vrot.lane.b32.xlu0 %v1189_v2, %s3643_s16  ;;  %1452 = vrot.lane.b32.xlu1 %v1190_v0, %s3643_s16 }
 0x27d   : > { %1519 = vrot.lane.b32.xlu0 %v1513_v17, %s3647_s24  ;;  %1590 = vrot.lane.b32.xlu1 %v1584_v19, %s3646_s22 }
 0x281   : > { %1317 = vrot.lane.b32.xlu0 %v1310_v23, %s3644_s17  ;;  %1319 = vrot.lane.b32.xlu1 %v1311_v26, %s3644_s17 }
 0x285   : > { %1390 = vrot.lane.b32.xlu0 %v1382_v25, %s3645_s20  ;;  %1388 = vrot.lane.b32.xlu1 %v1381_v28, %s3645_s20  ;;  %v3445_v28 = vld [vmem:[%s4538_s4 + $0x6] sm:$0x3] }
 0x289   : > { %1652 = vrot.lane.b32.xlu0 %v1188_v56, %s3648_s25  ;;  %1654 = vrot.lane.b32.xlu1 %v1189_v2, %s3648_s25 }
 0x28d   : > { %1523 = vrot.lane.b32.xlu0 %v1515_v31, %s3647_s24  ;;  %1521 = vrot.lane.b32.xlu1 %v1514_v34, %s3647_s24  ;;  %v3448_v31 = vld [vmem:[%s4538_s4 + $0x8] sm:$0x3] }
 0x291   : > { %1592 = vrot.lane.b32.xlu0 %v1585_v37, %s3646_s22  ;;  %1594 = vrot.lane.b32.xlu1 %v1586_v40, %s3646_s22 }
 0x295   : > { %1656 = vrot.lane.b32.xlu0 %v1190_v0, %s3648_s25  ;;  %1723 = vrot.lane.b32.xlu1 %v1717_v42, %s3649_s26 }
 0x299   : > { %1725 = vrot.lane.b32.xlu0 %v1718_v45, %s3649_s26  ;;  %1727 = vrot.lane.b32.xlu1 %v1719_v49, %s3649_s26 }
 0x29d   : > { %1786 = vperm.xlu0 %3605, %v1783_v51  }
 0x2a1   : > { %2494 = vrot.lane.b32.xlu0 %v4016_v52, %s3634_s27 }
 0x2df   : > { %v1195_v53 = vpop.permute.xlu0 %1194  ;;  %v1449_v55 = vpop.permute.xlu1 %1448 }
 0x2e3   : > { %v1199_v56 = vpop.permute.xlu0 %1198  ;;  %v1197_v57 = vpop.permute.xlu1 %1196 }
 0x2e4   : > { %v1200_v58 = vsel %vm519_vm12, %v1195_v53, %v1197_v57  ;;  %v1201_v60 = vsel %vm519_vm12, %v1197_v57, %v1199_v56  ;;  %v3454_v53 = vld [vmem:[%s4538_s4 + $0xc] sm:$0x3] }
 0x2e5   : > { %v1208_v61 = vsel %vm1206_vm7, %v1200_v58, 0  ;;  %3438 = vmatprep.subr.msk.bf16.mxu1 %vm1206_vm7, %v1201_v60  ;;  %v3457_v60 = vld [vmem:[%s4538_s4 + $0xe] sm:$0x3] }
 0x2e6   : > { %1228 = vmatpush1.bf16.msra.mxu1 %v1208_v61 }
 0x2e7   : > { %v1387_v63 = vpop.permute.xlu0 %1386  ;;  %v1316_v0 = vpop.permute.xlu1 %1315 }
 0x2e9   : > { %3439 = vmatmul.mubr.msk.bf16.vlgmr.msra.gmra.mxu1 %vm1202_vm9, %v3437_v62 }
 0x2ea   : > { %1364 = vmatprep.mubr.bf16.mxu1 %v3641_v18 }
 0x2eb   : > { %v1451_v2 = vpop.permute.xlu0 %1450  ;;  %v1453_v3 = vpop.permute.xlu1 %1452 }
 0x2ec   : > { %v1454_v17 = vsel %vm798_vm15, %v1449_v55, %v1451_v2  ;;  %v1455_v19 = vsel %vm798_vm15, %v1451_v2, %v1453_v3  ;;  %v3460_v3 = vld [vmem:[%s4538_s4 + $0x10] sm:$0x3] }
 0x2ed   : > { %v1460_v27 = vsel %vm1206_vm7, %v1454_v17, 0 }
 0x2ef   : > { %v1520_v6 = vpop.permute.xlu0 %1519  ;;  %v1591_v9 = vpop.permute.xlu1 %1590 }
 0x2f3   : > { %v1318_v10 = vpop.permute.xlu0 %1317  ;;  %v1320_v12 = vpop.permute.xlu1 %1319 }
 0x2f4   : > { %v1321_v13 = vsel %vm652_vm13, %v1316_v0, %v1318_v10  ;;  %v1322_v15 = vsel %vm652_vm13, %v1318_v10, %v1320_v12 }
 0x2f5   : > { %v1327_v16 = vsel %vm1206_vm7, %v1321_v13, 0  ;;  %3443 = vmatprep.subr.msk.bf16.mxu1 %vm1206_vm7, %v1322_v15 }
 0x2f6   : > { %1347 = vmatpush1.bf16.msra.mxu1 %v1327_v16 }
 0x2f7   : > { %v1391_v22 = vpop.permute.xlu0 %1390  ;;  %3449 = vmatprep.subr.msk.bf16.mxu1 %vm1206_vm7, %v1455_v19  ;;  %v1389_v23 = vpop.permute.xlu1 %1388 }
 0x2f8   : > { %v1392_v26 = vsel %vm735_vm14, %v1387_v63, %v1389_v23  ;;  %v1393_v20 = vsel %vm735_vm14, %v1389_v23, %v1391_v22 }
 0x2f9   : > { %v1398_v25 = vsel %vm1206_vm7, %v1392_v26, 0  ;;  %3444 = vmatmul.mubr.msk.bf16.vlgmr.msra.gmra.mxu1 %vm1202_vm9, %v3442_v21  ;;  %3446 = vmatprep.subr.msk.bf16.mxu0 %vm1206_vm7, %v1393_v20 }
 0x2fa   : > { %1418 = vmatpush1.bf16.msra.mxu0 %v1398_v25  ;;  %1480 = vmatpush1.bf16.msra.mxu1 %v1460_v27 }
 0x2fb   : > { %v1653_v29 = vpop.permute.xlu0 %1652  ;;  %v1655_v30 = vpop.permute.xlu1 %1654  ;;  %1497 = vmatprep.mubr.bf16.mxu1 %v3641_v18 }
 0x2fc   : > { %v1658_v51 = vsel %vm1023_vm2, %v1653_v29, %v1655_v30 }
 0x2fd   : > { %3447 = vmatmul.mubr.msk.bf16.vlgmr.msra.gmra.mxu0 %vm1202_vm9, %v3445_v28  ;;  %v1664_v58 = vsel %vm1206_vm7, %v1658_v51, 0 }
 0x2fe   : > { %1568 = vmatprep.mubr.bf16.mxu0 %v3641_v18 }
 0x2ff   : > { %v1524_v34 = vpop.permute.xlu0 %1523  ;;  %v1522_v35 = vpop.permute.xlu1 %1521 }
 0x300   : > { %v1525_v36 = vsel %vm879_vm0, %v1520_v6, %v1522_v35  ;;  %v1526_v37 = vsel %vm879_vm0, %v1522_v35, %v1524_v34 }
 0x301   : > { %v1531_v40 = vsel %vm1206_vm7, %v1525_v36, 0  ;;  %3450 = vmatmul.mubr.msk.bf16.vlgmr.msra.gmra.mxu1 %vm1202_vm9, %v3448_v31  ;;  %3452 = vmatprep.subr.msk.bf16.mxu0 %vm1206_vm7, %v1526_v37 }
 0x302   : > { %1551 = vmatpush1.bf16.msra.mxu0 %v1531_v40  ;;  %1639 = vmatprep.mubr.bf16.mxu1 %v3641_v18 }
 0x303   : > { %v1593_v42 = vpop.permute.xlu0 %1592  ;;  %v1595_v43 = vpop.permute.xlu1 %1594 }
 0x304   : > { %v1596_v44 = vsel %vm960_vm1, %v1591_v9, %v1593_v42  ;;  %v1597_v45 = vsel %vm960_vm1, %v1593_v42, %v1595_v43 }
 0x305   : > { %v1602_v49 = vsel %vm1206_vm7, %v1596_v44, 0  ;;  %3453 = vmatmul.mubr.msk.bf16.vlgmr.msra.gmra.mxu0 %vm1202_vm9, %v3451_v41  ;;  %3455 = vmatprep.subr.msk.bf16.mxu1 %vm1206_vm7, %v1597_v45 }
 0x306   : > { %1622 = vmatpush1.bf16.msra.mxu1 %v1602_v49  ;;  %1701 = vmatprep.mubr.bf16.mxu0 %v3641_v18 }
 0x307   : > { %v1657_v55 = vpop.permute.xlu0 %1656  ;;  %v1724_v56 = vpop.permute.xlu1 %1723 }
 0x308   : > { %v1659_v57 = vsel %vm1023_vm2, %v1655_v30, %v1657_v55 }
 0x309   : > { %3456 = vmatmul.mubr.msk.bf16.vlgmr.msra.gmra.mxu1 %vm1202_vm9, %v3454_v53  ;;  %3458 = vmatprep.subr.msk.bf16.mxu0 %vm1206_vm7, %v1659_v57 }
 0x30a   : > { %1684 = vmatpush1.bf16.msra.mxu0 %v1664_v58  ;;  %1772 = vmatprep.mubr.bf16.mxu1 %v3641_v18 }
 0x30b   : > { %v1726_v61 = vpop.permute.xlu0 %1725  ;;  %v1728_v62 = vpop.permute.xlu1 %1727 }
 0x30c   : > { %v1729_v63 = vsel %vm1104_vm3, %v1724_v56, %v1726_v61  ;;  %v1730_v0 = vsel %vm1104_vm3, %v1726_v61, %v1728_v62 }
 0x30d   : > { %v1735_v2 = vsel %vm1206_vm7, %v1729_v63, 0  ;;  %3459 = vmatmul.mubr.msk.bf16.vlgmr.msra.gmra.mxu0 %vm1202_vm9, %v3457_v60  ;;  %3461 = vmatprep.subr.msk.bf16.mxu1 %vm1206_vm7, %v1730_v0 }
 0x30e   : > { %1755 = vmatpush1.bf16.msra.mxu1 %v1735_v2  ;;  %1875 = vmatprep.mubr.bf16.mxu0 %v3641_v18 }
 0x311   : > { %3462 = vmatmul.mubr.msk.bf16.vlgmr.msra.gmra.mxu1 %vm1202_vm9, %v3460_v3 }
 0x312   : > { %1932 = vmatprep.mubr.bf16.mxu1 %v3641_v18 }
 0x318   : > { %v1787_v13 = vpop.permute.xlu0 %1786 }
 0x31c   : > { %v4092_v15 = vpop.permute.xlu0 %2494 }
 0x31d   : > { %v4096_v16 = vsel %vm454_vm4, 0.0, %v4092_v15 }
 0x31e   : > { %v4100_v17 = vpack.c.bf16 %v4096_v16, %v4096_v16 }
 0x320   : > { %2524 = vrot.lane.b32.xlu0 %v4100_v17, %s3642_s15 }
 0x336   : > { %v1297_v6 = vpop.f32.mrf.mxu0 }
 0x338   : > { %v1299_v9 = vpop.f32.mrf.mxu0 }
 0x33a   : > { %v1301_v10 = vpop.f32.mrf.mxu0 }
 0x33c   : > { %v1302_v12 = vpop.f32.mrf.mxu0 }
 0x3a9   : > { %v1247_v19 = vpop.f32.mrf.mxu1 }
 0x3aa   : > { %v1298_v36 = vadd.f32 %v1297_v6, %v1247_v19 }
 0x3ab   : > { %v1249_v21 = vpop.f32.mrf.mxu1 }
 0x3ac   : > { %v1300_v41 = vadd.f32 %v1299_v9, %v1249_v21 }
 0x3ad   : > { %v1251_v22 = vpop.f32.mrf.mxu1 }
 0x3af   : > { %v1252_v23 = vpop.f32.mrf.mxu1 }
 0x3b9   : > { %v1366_v26 = vpop.f32.mrf.mxu1 }
 0x3ba   : > { %v1373_v42 = vadd.f32 %v1366_v26, %v1298_v36 }
 0x3bb   : > { %v1368_v20 = vpop.f32.mrf.mxu1 }
 0x3bc   : > { %v1374_v45 = vadd.f32 %v1368_v20, %v1300_v41 }
 0x3bd   : > { %v1370_v27 = vpop.f32.mrf.mxu1  ;;  %v1437_v25 = vpop.f32.mrf.mxu0 }
 0x3be   : > { %v1444_v49 = vadd.f32 %v1437_v25, %v1373_v42 }
 0x3bf   : > { %v1371_v28 = vpop.f32.mrf.mxu1  ;;  %v1439_v29 = vpop.f32.mrf.mxu0 }
 0x3c0   : > { %v1445_v55 = vadd.f32 %v1439_v29, %v1374_v45 }
 0x3c1   : > { %v1441_v30 = vpop.f32.mrf.mxu0  ;;  %v1499_v31 = vpop.f32.mrf.mxu1 }
 0x3c2   : > { %v1506_v56 = vadd.f32 %v1499_v31, %v1444_v49  ;;  %v2493_v31 = vcombine.high %v4016_v52, %v4016_v52 }
 0x3c3   : > { %v1442_v34 = vpop.f32.mrf.mxu0  ;;  %v1501_v35 = vpop.f32.mrf.mxu1 }
 0x3c4   : > { %v1507_v60 = vadd.f32 %v1501_v35, %v1445_v55 }
 0x3c5   : > { %v1503_v37 = vpop.f32.mrf.mxu1  ;;  %v1570_v40 = vpop.f32.mrf.mxu0 }
 0x3c6   : > { %v1577_v61 = vadd.f32 %v1570_v40, %v1506_v56 }
 0x3c7   : > { %v1504_v43 = vpop.f32.mrf.mxu1  ;;  %v1572_v44 = vpop.f32.mrf.mxu0 }
 0x3c8   : > { %v1578_v0 = vadd.f32 %v1572_v44, %v1507_v60 }
 0x3c9   : > { %v1574_v51 = vpop.f32.mrf.mxu0  ;;  %v1641_v53 = vpop.f32.mrf.mxu1 }
 0x3ca   : > { %v1648_v2 = vadd.f32 %v1641_v53, %v1577_v61 }
 0x3cb   : > { %v1575_v57 = vpop.f32.mrf.mxu0  ;;  %v1643_v58 = vpop.f32.mrf.mxu1 }
 0x3cc   : > { %v1649_v9 = vadd.f32 %v1643_v58, %v1578_v0 }
 0x3cd   : > { %v1645_v62 = vpop.f32.mrf.mxu1  ;;  %v1703_v63 = vpop.f32.mrf.mxu0 }
 0x3ce   : > { %v1710_v10 = vadd.f32 %v1703_v63, %v1648_v2  ;;  %v3609_v62 = vld [vmem:[%s4540_s6] sm:$0xff]  }
 0x3cf   : > { %v1646_v3 = vpop.f32.mrf.mxu1  ;;  %v1705_v6 = vpop.f32.mrf.mxu0 }
 0x3d0   : > { %v1711_v21 = vadd.f32 %v1705_v6, %v1649_v9 }
 0x3d1   : > { %v1707_v12 = vpop.f32.mrf.mxu0  ;;  %v1774_v19 = vpop.f32.mrf.mxu1 }
 0x3d2   : > { %v1781_v22 = vadd.f32 %v1774_v19, %v1710_v10 }
 0x3d3   : > { %v1708_v23 = vpop.f32.mrf.mxu0  ;;  %v1776_v26 = vpop.f32.mrf.mxu1 }
 0x3d4   : > { %v1789_v20 = vadd.f32 %v1787_v13, %v1781_v22  ;;  %v1782_v27 = vadd.f32 %v1776_v26, %v1711_v21 }
 0x3d5   : > { %v1778_v25 = vpop.f32.mrf.mxu1 }
 0x3d6   : > { %v1790_v28 = vadd.f32 %v1787_v13, %v1782_v27  ;;  %1796 = vrot.lane.b32.xlu1 %v1789_v20, %s3634_s27 }
 0x3d7   : > { %v1779_v29 = vpop.f32.mrf.mxu1 }
 0x3d8   : > { %v1793_v30 = vcombine.low %v1789_v20, %v1790_v28 }
 0x3da   : > { %1795 = vst [vmem:[%s440_s29] sm:$0xff] %v1793_v30  ;;  %1798 = vrot.lane.b32.xlu1 %v1790_v28, %s3634_s27 }
 0x3de   : > { %2496 = vrot.lane.b32.xlu1 %v2493_v31, %s3634_s27  ;;  %v2641_v31 = vmul.f32 %v3764_v24, %v4096_v16 }
 0x448   : > { %v1797_v34 = vpop.permute.xlu1 %1796 }
 0x449   : > { %v1804_v35 = vsel %vm454_vm4, 0.0, %v1797_v34 }
 0x44a   : > { %v1815_v13 = vpack.c.bf16 %v1804_v35, %v1804_v35  ;;  %v1806_v36 = vmul.f32 %v3731_v8, %v1804_v35  ;;  %v2024_v55 = vmul.f32 %v3785_v33, %v1804_v35  ;;  %v2177_v57 = vmul.f32 %v3821_v48, %v1804_v35 }
 0x44b   : > { %v1943_v58 = vmul.f32 %v3764_v24, %v1804_v35  ;;  %v2258_v0 = vmul.f32 %v3796_v39, %v1804_v35  ;;  %v2411_v10 = vmul.f32 %v3849_v1, %v1804_v35  ;;  %v2647_v35 = vpack.c.bf16 %v2641_v31, %v2641_v31 }
 0x44c   : > { %1826 = vrot.lane.b32.xlu0 %v1815_v13, %s3642_s15  ;;  %v1799_v37 = vpop.permute.xlu1 %1798  ;;  %v1810_v41 = vpack.c.bf16 %v1806_v36, %v1806_v36  ;;  %v2183_v60 = vpack.c.bf16 %v2177_v57, %v2177_v57  ;;  %v2722_v24 = vmul.f32 %v3785_v33, %v4096_v16 }
 0x44d   : > { %v4117_v40 = vsel %vm454_vm4, %v1797_v34, %v1799_v37  ;;  %v4122_v42 = vsel %vm454_vm4, %v1799_v37, 0.0  ;;  %v1949_v61 = vpack.c.bf16 %v1943_v58, %v1943_v58  ;;  %v2264_v3 = vpack.c.bf16 %v2258_v0, %v2258_v0 }
 0x44e   : > { %v1807_v52 = vmul.f32 %v3736_v11, %v4117_v40  ;;  %v1895_v49 = vsel %vm526_vm5, %v1810_v41, 0  ;;  %v1817_v51 = vpack.c.bf16 %v4122_v42, %v4122_v42  ;;  %v1816_v56 = vpack.c.bf16 %v4117_v40, %v4117_v40 }
 0x44f   : > { %v1944_v63 = vmul.f32 %v4117_v40, %v3811_v46  ;;  %v2026_v6 = vmul.f32 %v3794_v38, %v4122_v42  ;;  %v2417_v21 = vpack.c.bf16 %v2411_v10, %v2411_v10  ;;  %v2179_v22 = vmul.f32 %v3829_v54, %v4122_v42 }
 0x450   : > { %2347 = vrot.lane.b32.xlu0 %v1815_v13, %s3648_s25  ;;  %v2497_v43 = vpop.permute.xlu1 %2496  ;;  %v1811_v44 = vpack.c.bf16 %v1807_v52, %v1807_v52  ;;  %v1945_v23 = vmul.f32 %v3783_v32, %v4122_v42  ;;  %v2259_v27 = vmul.f32 %v4117_v40, %v3853_v4  ;;  %v2025_v25 = vmul.f32 %v4117_v40, %v3816_v47 }
 0x451   : > { %v4127_v45 = vsel %vm454_vm4, %v4092_v15, %v2497_v43  ;;  %v2030_v15 = vpack.c.bf16 %v2024_v55, %v2024_v55  ;;  %v1950_v2 = vpack.c.bf16 %v1944_v63, %v1944_v63  ;;  %v2032_v9 = vpack.c.bf16 %v2026_v6, %v2026_v6 }
 0x452   : > { %3469 = vmatprep.subr.msk.bf16.mxu1 %vm526_vm5, %v1811_v44  ;;  %v4135_v53 = vpack.c.bf16 %v4127_v45, %v4127_v45  ;;  %v4167_v12 = vsel %vm454_vm4, %v2497_v43, 0.0  ;;  %v2185_v26 = vpack.c.bf16 %v2179_v22, %v2179_v22  ;;  %v1951_v20 = vpack.c.bf16 %v1945_v23, %v1945_v23 }
 0x453   : > { %1915 = vmatpush1.bf16.msra.mxu1 %v1895_v49  ;;  %v4173_v19 = vpack.c.bf16 %v4167_v12, %v4167_v12  ;;  %v2265_v28 = vpack.c.bf16 %v2259_v27, %v2259_v27  ;;  %v2031_v29 = vpack.c.bf16 %v2025_v25, %v2025_v25  ;;  %v2642_v30 = vmul.f32 %v4127_v45, %v3811_v46 }
 0x454   : > { %1830 = vrot.lane.b32.xlu0 %v1817_v51, %s3642_s15  ;;  %2526 = vrot.lane.b32.xlu1 %v4135_v53, %s3642_s15  ;;  %v2178_v36 = vmul.f32 %v4117_v40, %v3839_v59  ;;  %v2260_v52 = vmul.f32 %v3825_v50, %v4122_v42  ;;  %v2728_v41 = vpack.c.bf16 %v2722_v24, %v2722_v24  ;;  %vm3295_vm4 = vcmask 7168  }
 0x455   : > { %v2648_v34 = vpack.c.bf16 %v2642_v30, %v2642_v30  ;;  %v2643_v44 = vmul.f32 %v3783_v32, %v4167_v12  ;;  %v2723_v32 = vmul.f32 %v4127_v45, %v3816_v47  ;;  %v2876_v58 = vmul.f32 %v4127_v45, %v3839_v59 }
 0x456   : > { %3470 = vmatmul.mubr.msk.bf16.vlgmr.msra.gmra.mxu1 %vm522_vm6, %v3609_v62  ;;  %v2184_v37 = vpack.c.bf16 %v2178_v36, %v2178_v36  ;;  %v2266_v43 = vpack.c.bf16 %v2260_v52, %v2260_v52  ;;  %v2958_v59 = vmul.f32 %v3825_v50, %v4167_v12 }
 0x457   : > { %2090 = vmatprep.mubr.bf16.mxu1 %v3641_v18  ;;  %v2649_v49 = vpack.c.bf16 %v2643_v44, %v2643_v44 }
 0x458   : > { %2041 = vrot.lane.b32.xlu0 %v2030_v15, %s3645_s20  ;;  %2113 = vrot.lane.b32.xlu1 %v1815_v13, %s3643_s16  ;;  %v2412_v13 = vmul.f32 %v4117_v40, %v3871_v14  ;;  %v2724_v40 = vmul.f32 %v3794_v38, %v4167_v12  ;;  %v2875_v38 = vmul.f32 %v3821_v48, %v4096_v16 }
 0x459   : > { %v2957_v48 = vmul.f32 %v4127_v45, %v3853_v4  ;;  %v2964_v63 = vpack.c.bf16 %v2958_v59, %v2958_v59 }
 0x45a   : > { %v2418_v46 = vpack.c.bf16 %v2412_v13, %v2412_v13  ;;  %v2730_v33 = vpack.c.bf16 %v2724_v40, %v2724_v40  ;;  %v2881_v15 = vpack.c.bf16 %v2875_v38, %v2875_v38 }
 0x45b   : > { %v2963_v47 = vpack.c.bf16 %v2957_v48, %v2957_v48 }
 0x45c   : > { %2115 = vrot.lane.b32.xlu0 %v1816_v56, %s3643_s16  ;;  %1828 = vrot.lane.b32.xlu1 %v1816_v56, %s3642_s15 }
 0x460   : > { %2194 = vrot.lane.b32.xlu0 %v2183_v60, %s3647_s24  ;;  %1960 = vrot.lane.b32.xlu1 %v1949_v61, %s3644_s17  ;;  %v2956_v60 = vmul.f32 %v3796_v39, %v4096_v16  ;;  %v3110_v61 = vmul.f32 %v4127_v45, %v3871_v14  ;;  %v3195_v39 = vld [vmem:[%s4542_s8 + $0x8] sm:$0xff]  ;;  %v3109_v14 = vmul.f32 %v3849_v1, %v4096_v16 }
 0x462   : > { %v2962_v4 = vpack.c.bf16 %v2956_v60, %v2956_v60  ;;  %v3116_v62 = vpack.c.bf16 %v3110_v61, %v3110_v61  ;;  %v3115_v50 = vpack.c.bf16 %v3109_v14, %v3109_v14  ;;  %v3613_v60 = vld [vmem:[%s4540_s6 + $0x28] sm:$0xff]  }
 0x464   : > { %2351 = vrot.lane.b32.xlu0 %v1817_v51, %s3648_s25  ;;  %2117 = vrot.lane.b32.xlu1 %v1817_v51, %s3643_s16  ;;  %v2413_v51 = vmul.f32 %v3857_v5, %v4122_v42  ;;  %v2877_v42 = vmul.f32 %v3829_v54, %v4167_v12  ;;  %v2882_v54 = vpack.c.bf16 %v2876_v58, %v2876_v58 }
 0x466   : > { %v2419_v55 = vpack.c.bf16 %v2413_v51, %v2413_v51  ;;  %v2883_v57 = vpack.c.bf16 %v2877_v42, %v2877_v42  ;;  %v3612_v42 = vld [vmem:[%s4540_s6 + $0x20] sm:$0xff]  }
 0x468   : > { %1962 = vrot.lane.b32.xlu0 %v1950_v2, %s3644_s17  ;;  %2275 = vrot.lane.b32.xlu1 %v2264_v3, %s3646_s22  ;;  %v3194_v2 = vld [vmem:[%s4542_s8] sm:$0xff]  ;;  %v4265_v3 = vpop.permute.xlu0 %2524 }
 0x46c   : > { %2045 = vrot.lane.b32.xlu0 %v2032_v9, %s3645_s20  ;;  %2349 = vrot.lane.b32.xlu1 %v1816_v56, %s3648_s25  ;;  %v2729_v56 = vpack.c.bf16 %v2723_v32, %v2723_v32  ;;  %v3611_v32 = vld [vmem:[%s4540_s6 + $0x18] sm:$0xff]  }
 0x470   : > { %2528 = vrot.lane.b32.xlu0 %v4173_v19, %s3642_s15  ;;  %2428 = vrot.lane.b32.xlu1 %v2417_v21, %s3649_s26 }
 0x474   : > { %2198 = vrot.lane.b32.xlu0 %v2185_v26, %s3647_s24  ;;  %1964 = vrot.lane.b32.xlu1 %v1951_v20, %s3644_s17  ;;  %v3608_v26 = vld [vmem:[%s4540_s6 + $0x8] sm:$0xff]  }
 0x478   : > { %2277 = vrot.lane.b32.xlu0 %v2265_v28, %s3646_s22  ;;  %2043 = vrot.lane.b32.xlu1 %v2031_v29, %s3645_s20 }
 0x47c   : > { %2660 = vrot.lane.b32.xlu0 %v2648_v34, %s3644_s17  ;;  %2658 = vrot.lane.b32.xlu1 %v2647_v35, %s3644_s17 }
 0x480   : > { %2430 = vrot.lane.b32.xlu0 %v2418_v46, %s3649_s26  ;;  %2196 = vrot.lane.b32.xlu1 %v2184_v37, %s3647_s24 }
 0x484   : > { %2739 = vrot.lane.b32.xlu0 %v2728_v41, %s3645_s20  ;;  %2279 = vrot.lane.b32.xlu1 %v2266_v43, %s3646_s22  ;;  %v3610_v41 = vld [vmem:[%s4540_s6 + $0x10] sm:$0xff]  }
 0x488   : > { %2743 = vrot.lane.b32.xlu0 %v2730_v33, %s3645_s20  ;;  %2662 = vrot.lane.b32.xlu1 %v2649_v49, %s3644_s17 }
 0x48c   : > { %2813 = vrot.lane.b32.xlu0 %v4135_v53, %s3643_s16  ;;  %2432 = vrot.lane.b32.xlu1 %v2419_v55, %s3649_s26 }
 0x490   : > { %2892 = vrot.lane.b32.xlu0 %v2881_v15, %s3647_s24  ;;  %2741 = vrot.lane.b32.xlu1 %v2729_v56, %s3645_s20 }
 0x494   : > { %2896 = vrot.lane.b32.xlu0 %v2883_v57, %s3647_s24  ;;  %2811 = vrot.lane.b32.xlu1 %v4100_v17, %s3643_s16 }
 0x498   : > { %2975 = vrot.lane.b32.xlu0 %v2963_v47, %s3646_s22  ;;  %2815 = vrot.lane.b32.xlu1 %v4173_v19, %s3643_s16 }
 0x49c   : > { %3045 = vrot.lane.b32.xlu0 %v4100_v17, %s3648_s25  ;;  %2894 = vrot.lane.b32.xlu1 %v2882_v54, %s3647_s24  ;;  %v3111_v17 = vmul.f32 %v3857_v5, %v4167_v12 }
 0x49e   : > { %v3117_v0 = vpack.c.bf16 %v3111_v17, %v3111_v17  ;;  %v3614_v17 = vld [vmem:[%s4540_s6 + $0x30] sm:$0xff]  }
 0x4a0   : > { %3049 = vrot.lane.b32.xlu0 %v4173_v19, %s3648_s25  ;;  %2973 = vrot.lane.b32.xlu1 %v2962_v4, %s3646_s22 }
 0x4a4   : > { %3128 = vrot.lane.b32.xlu0 %v3116_v62, %s3649_s26  ;;  %2977 = vrot.lane.b32.xlu1 %v2964_v63, %s3646_s22 }
 0x4a8   : > { %3203 = vperm.xlu0 %3605, %v3195_v39   ;;  %3047 = vrot.lane.b32.xlu1 %v4135_v53, %s3648_s25 }
 0x4ac   : > { %3126 = vrot.lane.b32.xlu1 %v3115_v50, %s3649_s26 }
 0x4b0   : > { %3130 = vrot.lane.b32.xlu1 %v3117_v0, %s3649_s26 }
 0x4b4   : > { %3198 = vperm.xlu1 %3604, %v3194_v2  }
 0x4be   : > { %v1827_v1 = vpop.permute.xlu0 %1826 }
 0x4c2   : > { %v2348_v6 = vpop.permute.xlu0 %2347 }
 0x4c6   : > { %v1831_v9 = vpop.permute.xlu0 %1830  ;;  %v4267_v53 = vpop.permute.xlu1 %2526 }
 0x4ca   : > { %v2042_v10 = vpop.permute.xlu0 %2041  ;;  %v2114_v19 = vpop.permute.xlu1 %2113 }
 0x4ce   : > { %v2116_v5 = vpop.permute.xlu0 %2115  ;;  %v1829_v12 = vpop.permute.xlu1 %1828 }
 0x4cf   : > { %v1832_v21 = vsel %vm519_vm12, %v1827_v1, %v1829_v12  ;;  %v1833_v22 = vsel %vm519_vm12, %v1829_v12, %v1831_v9  ;;  %v2119_v43 = vsel %vm798_vm15, %v2114_v19, %v2116_v5  ;;  %v2505_v9 = vmul.f32 %v3736_v11, %v4127_v45 }
 0x4d0   : > { %v1838_v23 = vsel %vm526_vm5, %v1832_v21, 0  ;;  %3466 = vmatprep.subr.msk.bf16.mxu0 %vm526_vm5, %v1833_v22  ;;  %v2125_v55 = vsel %vm526_vm5, %v2119_v43, 0  ;;  %v2530_v19 = vsel %vm519_vm12, %v4265_v3, %v4267_v53 }
 0x4d1   : > { %1858 = vmatpush1.bf16.msra.mxu0 %v1838_v23  ;;  %v2536_v23 = vsel %vm526_vm5, %v2530_v19, 0 }
 0x4d2   : > { %v2195_v20 = vpop.permute.xlu0 %2194  ;;  %v1961_v27 = vpop.permute.xlu1 %1960 }
 0x4d4   : > { %3467 = vmatmul.mubr.msk.bf16.vlgmr.msra.gmra.mxu0 %vm522_vm6, %v3608_v26 }
 0x4d5   : > { %2009 = vmatprep.mubr.bf16.mxu0 %v3641_v18 }
 0x4d6   : > { %v2352_v25 = vpop.permute.xlu0 %2351  ;;  %v2118_v28 = vpop.permute.xlu1 %2117 }
 0x4d7   : > { %v2120_v40 = vsel %vm798_vm15, %v2116_v5, %v2118_v28 }
 0x4da   : > { %v1963_v29 = vpop.permute.xlu0 %1962  ;;  %v2276_v30 = vpop.permute.xlu1 %2275 }
 0x4db   : > { %v1966_v36 = vsel %vm652_vm13, %v1961_v27, %v1963_v29  ;;  %v3617_v27 = vld [vmem:[%s4541_s7 + $0x8] sm:$0xff]  }
 0x4dc   : > { %v1972_v52 = vsel %vm526_vm5, %v1966_v36, 0 }
 0x4de   : > { %v2046_v31 = vpop.permute.xlu0 %2045  ;;  %v2350_v34 = vpop.permute.xlu1 %2349 }
 0x4df   : > { %v2353_v4 = vsel %vm1023_vm2, %v2348_v6, %v2350_v34  ;;  %v2354_v61 = vsel %vm1023_vm2, %v2350_v34, %v2352_v25  ;;  %v3615_v6 = vld [vmem:[%s4540_s6 + $0x38] sm:$0xff]   ;;  %v3618_v34 = vld [vmem:[%s4541_s7] sm:$0xff]  }
 0x4e0   : > { %v2359_v14 = vsel %vm526_vm5, %v2353_v4, 0  ;;  %v3623_v4 = vld [vmem:[%s4541_s7 + $0x30] sm:$0xff]  }
 0x4e2   : > { %v2529_v35 = vpop.permute.xlu0 %2528  ;;  %v4278_v13 = vpop.permute.xlu1 %2428 }
 0x4e3   : > { %v2531_v0 = vsel %vm519_vm12, %v4267_v53, %v2529_v35 }
 0x4e6   : > { %v2199_v46 = vpop.permute.xlu0 %2198  ;;  %v1965_v37 = vpop.permute.xlu1 %1964 }
 0x4e7   : > { %v1967_v24 = vsel %vm652_vm13, %v1963_v29, %v1965_v37  ;;  %v3619_v37 = vld [vmem:[%s4541_s7 + $0x10] sm:$0xff]  }
 0x4e8   : > { %3474 = vmatprep.subr.msk.bf16.mxu0 %vm526_vm5, %v1967_v24 }
 0x4e9   : > { %1992 = vmatpush1.bf16.msra.mxu0 %v1972_v52 }
 0x4ea   : > { %v2278_v44 = vpop.permute.xlu0 %2277  ;;  %3484 = vmatprep.subr.msk.bf16.mxu0 %vm526_vm5, %v2120_v40  ;;  %v2044_v33 = vpop.permute.xlu1 %2043 }
 0x4eb   : > { %v2047_v49 = vsel %vm735_vm14, %v2042_v10, %v2044_v33  ;;  %v2048_v51 = vsel %vm735_vm14, %v2044_v33, %v2046_v31  ;;  %v2281_v59 = vsel %vm960_vm1, %v2276_v30, %v2278_v44  ;;  %v2504_v10 = vmul.f32 %v3731_v8, %v4096_v16  ;;  %v3616_v16 = vld [vmem:[%s4540_s6 + $0x40] sm:$0xff]  }
 0x4ec   : > { %v2053_v38 = vsel %vm526_vm5, %v2047_v49, 0  ;;  %3475 = vmatmul.mubr.msk.bf16.vlgmr.msra.gmra.mxu0 %vm522_vm6, %v3610_v41  ;;  %3479 = vmatprep.subr.msk.bf16.mxu1 %vm526_vm5, %v2048_v51  ;;  %v2287_v50 = vsel %vm526_vm5, %v2281_v59, 0  ;;  %v2509_v8 = vpack.c.bf16 %v2505_v9, %v2505_v9 }
 0x4ed   : > { %2073 = vmatpush1.bf16.msra.mxu1 %v2053_v38  ;;  %2145 = vmatpush1.bf16.msra.mxu0 %v2125_v55  ;;  %v2508_v45 = vpack.c.bf16 %v2504_v10, %v2504_v10  ;;  %v3621_v38 = vld [vmem:[%s4541_s7 + $0x20] sm:$0xff]  }
 0x4ee   : > { %v4299_v15 = vpop.permute.xlu0 %2660  ;;  %v4301_v56 = vpop.permute.xlu1 %2658  ;;  %2162 = vmatprep.mubr.bf16.mxu0 %v3641_v18 }
 0x4ef   : > { %v2664_v25 = vsel %vm652_vm13, %v4301_v56, %v4299_v15 }
 0x4f0   : > { %3480 = vmatmul.mubr.msk.bf16.vlgmr.msra.gmra.mxu1 %vm522_vm6, %v3611_v32  ;;  %v2670_v30 = vsel %vm526_vm5, %v2664_v25, 0 }
 0x4f1   : > { %2243 = vmatprep.mubr.bf16.mxu1 %v3641_v18 }
 0x4f2   : > { %v2431_v57 = vpop.permute.xlu0 %2430  ;;  %v2197_v48 = vpop.permute.xlu1 %2196 }
 0x4f3   : > { %v2200_v47 = vsel %vm879_vm0, %v2195_v20, %v2197_v48  ;;  %v2201_v58 = vsel %vm879_vm0, %v2197_v48, %v2199_v46  ;;  %v2434_v5 = vsel %vm1104_vm3, %v4278_v13, %v2431_v57  ;;  %v2593_v20 = vsel %vm526_vm5, %v2508_v45, 0 }
 0x4f4   : > { %v2206_v54 = vsel %vm526_vm5, %v2200_v47, 0  ;;  %3485 = vmatmul.mubr.msk.bf16.vlgmr.msra.gmra.mxu0 %vm522_vm6, %v3612_v42  ;;  %3489 = vmatprep.subr.msk.bf16.mxu1 %vm526_vm5, %v2201_v58  ;;  %v2440_v11 = vsel %vm526_vm5, %v2434_v5, 0 }
 0x4f5   : > { %2226 = vmatpush1.bf16.msra.mxu1 %v2206_v54  ;;  %2324 = vmatprep.mubr.bf16.mxu0 %v3641_v18 }
 0x4f6   : > { %v2740_v62 = vpop.permute.xlu0 %2739  ;;  %3499 = vmatprep.subr.msk.bf16.mxu1 %vm526_vm5, %v2354_v61  ;;  %v2280_v63 = vpop.permute.xlu1 %2279 }
 0x4f7   : > { %v2282_v39 = vsel %vm960_vm1, %v2278_v44, %v2280_v63  ;;  %v3620_v44 = vld [vmem:[%s4541_s7 + $0x18] sm:$0xff]  }
 0x4f8   : > { %3490 = vmatmul.mubr.msk.bf16.vlgmr.msra.gmra.mxu1 %vm522_vm6, %v3613_v60  ;;  %3494 = vmatprep.subr.msk.bf16.mxu0 %vm526_vm5, %v2282_v39 }
 0x4f9   : > { %2307 = vmatpush1.bf16.msra.mxu0 %v2287_v50  ;;  %2379 = vmatpush1.bf16.msra.mxu1 %v2359_v14 }
 0x4fa   : > { %v2744_v2 = vpop.permute.xlu0 %2743  ;;  %3509 = vmatprep.subr.msk.bf16.mxu1 %vm526_vm5, %v2531_v0  ;;  %v2663_v1 = vpop.permute.xlu1 %2662  ;;  %2396 = vmatprep.mubr.bf16.mxu1 %v3641_v18 }
 0x4fb   : > { %v2665_v3 = vsel %vm652_vm13, %v4299_v15, %v2663_v1 }
 0x4fc   : > { %3495 = vmatmul.mubr.msk.bf16.vlgmr.msra.gmra.mxu0 %vm522_vm6, %v3614_v17  ;;  %v3625_v17 = vld [vmem:[%s4541_s7 + $0x40] sm:$0xff]  }
 0x4fd   : > { %2477 = vmatprep.mubr.bf16.mxu0 %v3641_v18 }
 0x4fe   : > { %v2814_v12 = vpop.permute.xlu0 %2813  ;;  %v2433_v21 = vpop.permute.xlu1 %2432 }
 0x4ff   : > { %v2435_v22 = vsel %vm1104_vm3, %v2431_v57, %v2433_v21  ;;  %v3622_v57 = vld [vmem:[%s4541_s7 + $0x28] sm:$0xff]  }
 0x500   : > { %3500 = vmatmul.mubr.msk.bf16.vlgmr.msra.gmra.mxu1 %vm522_vm6, %v3615_v6  ;;  %3504 = vmatprep.subr.msk.bf16.mxu0 %vm526_vm5, %v2435_v22 }
 0x501   : > { %2556 = vmatpush1.bf16.msra.mxu1 %v2536_v23  ;;  %2460 = vmatpush1.bf16.msra.mxu0 %v2440_v11 }
 0x502   : > { %3517 = vmatprep.subr.msk.bf16.mxu1 %vm526_vm5, %v2665_v3  ;;  %v2893_v53 = vpop.permute.xlu0 %2892  ;;  %v2742_v26 = vpop.permute.xlu1 %2741  ;;  %3512 = vmatprep.subr.msk.bf16.mxu0 %vm526_vm5, %v2509_v8 }
 0x503   : > { %2573 = vmatprep.mubr.bf16.mxu1 %v3641_v18  ;;  %v2746_v28 = vsel %vm735_vm14, %v2742_v26, %v2744_v2  ;;  %v2745_v35 = vsel %vm735_vm14, %v2740_v62, %v2742_v26  ;;  %v3624_v62 = vld [vmem:[%s4541_s7 + $0x38] sm:$0xff]  }
 0x504   : > { %3505 = vmatmul.mubr.msk.bf16.vlgmr.msra.gmra.mxu0 %vm522_vm6, %v3616_v16  ;;  %v2751_v46 = vsel %vm526_vm5, %v2745_v35, 0 }
 0x505   : > { %2613 = vmatpush1.bf16.msra.mxu0 %v2593_v20  ;;  %2630 = vmatprep.mubr.bf16.mxu0 %v3641_v18 }
 0x506   : > { %v2812_v29 = vpop.permute.xlu1 %2811  ;;  %3522 = vmatprep.subr.msk.bf16.mxu0 %vm526_vm5, %v2746_v28  ;;  %v2897_v31 = vpop.permute.xlu0 %2896 }
 0x507   : > { %v2817_v24 = vsel %vm798_vm15, %v2812_v29, %v2814_v12 }
 0x508   : > { %3510 = vmatmul.mubr.msk.bf16.vlgmr.msra.gmra.mxu1 %vm522_vm6, %v3617_v27  ;;  %v2823_v40 = vsel %vm526_vm5, %v2817_v24, 0 }
 0x509   : > { %2690 = vmatpush1.bf16.msra.mxu1 %v2670_v30  ;;  %2707 = vmatprep.mubr.bf16.mxu1 %v3641_v18 }
 0x50a   : > { %v2816_v13 = vpop.permute.xlu1 %2815  ;;  %v2976_v52 = vpop.permute.xlu0 %2975 }
 0x50b   : > { %v2818_v36 = vsel %vm798_vm15, %v2814_v12, %v2816_v13 }
 0x50c   : > { %3513 = vmatmul.mubr.msk.bf16.vlgmr.msra.gmra.mxu0 %vm522_vm6, %v3618_v34  ;;  %3527 = vmatprep.subr.msk.bf16.mxu1 %vm526_vm5, %v2818_v36 }
 0x50d   : > { %2771 = vmatpush1.bf16.msra.mxu0 %v2751_v46  ;;  %2788 = vmatprep.mubr.bf16.mxu0 %v3641_v18 }
 0x50e   : > { %v2895_v41 = vpop.permute.xlu1 %2894  ;;  %v3046_v51 = vpop.permute.xlu0 %3045 }
 0x50f   : > { %v2899_v43 = vsel %vm879_vm0, %v2895_v41, %v2897_v31  ;;  %v2898_v33 = vsel %vm879_vm0, %v2893_v53, %v2895_v41 }
 0x510   : > { %3518 = vmatmul.mubr.msk.bf16.vlgmr.msra.gmra.mxu1 %vm522_vm6, %v3619_v37  ;;  %3532 = vmatprep.subr.msk.bf16.mxu0 %vm526_vm5, %v2899_v43  ;;  %v2904_v55 = vsel %vm526_vm5, %v2898_v33, 0 }
 0x511   : > { %2843 = vmatpush1.bf16.msra.mxu1 %v2823_v40  ;;  %2860 = vmatprep.mubr.bf16.mxu1 %v3641_v18 }
 0x512   : > { %v2974_v49 = vpop.permute.xlu1 %2973  ;;  %v3050_v48 = vpop.permute.xlu0 %3049 }
 0x513   : > { %v2979_v32 = vsel %vm960_vm1, %v2974_v49, %v2976_v52 }
 0x514   : > { %3523 = vmatmul.mubr.msk.bf16.vlgmr.msra.gmra.mxu0 %vm522_vm6, %v3620_v44  ;;  %v2985_v42 = vsel %vm526_vm5, %v2979_v32, 0 }
 0x515   : > { %2924 = vmatpush1.bf16.msra.mxu0 %v2904_v55  ;;  %2941 = vmatprep.mubr.bf16.mxu0 %v3641_v18 }
 0x516   : > { %v2978_v15 = vpop.permute.xlu1 %2977  ;;  %v3129_v59 = vpop.permute.xlu0 %3128 }
 0x517   : > { %v2980_v56 = vsel %vm960_vm1, %v2976_v52, %v2978_v15 }
 0x518   : > { %3528 = vmatmul.mubr.msk.bf16.vlgmr.msra.gmra.mxu1 %vm522_vm6, %v3621_v38  ;;  %3537 = vmatprep.subr.msk.bf16.mxu1 %vm526_vm5, %v2980_v56 }
 0x519   : > { %3005 = vmatpush1.bf16.msra.mxu1 %v2985_v42  ;;  %3022 = vmatprep.mubr.bf16.mxu1 %v3641_v18 }
 0x51a   : > { %v3048_v47 = vpop.permute.xlu1 %3047 }
 0x51b   : > { %v3051_v58 = vsel %vm1023_vm2, %v3046_v51, %v3048_v47  ;;  %v3052_v54 = vsel %vm1023_vm2, %v3048_v47, %v3050_v48 }
 0x51c   : > { %v3057_v60 = vsel %vm526_vm5, %v3051_v58, 0  ;;  %3533 = vmatmul.mubr.msk.bf16.vlgmr.msra.gmra.mxu0 %vm522_vm6, %v3622_v57  ;;  %3542 = vmatprep.subr.msk.bf16.mxu0 %vm526_vm5, %v3052_v54 }
 0x51d   : > { %3077 = vmatpush1.bf16.msra.mxu0 %v3057_v60  ;;  %3094 = vmatprep.mubr.bf16.mxu0 %v3641_v18 }
 0x51e   : > { %v3127_v61 = vpop.permute.xlu1 %3126 }
 0x51f   : > { %v3132_v63 = vsel %vm1104_vm3, %v3127_v61, %v3129_v59 }
 0x520   : > { %3538 = vmatmul.mubr.msk.bf16.vlgmr.msra.gmra.mxu1 %vm522_vm6, %v3623_v4  ;;  %v3138_v50 = vsel %vm526_vm5, %v3132_v63, 0 }
 0x521   : > { %3175 = vmatprep.mubr.bf16.mxu1 %v3641_v18  ;;  %v4438_v18 = vpop.f32.mrf.mxu1 }
 0x522   : > { %v3131_v39 = vpop.permute.xlu1 %3130 }
 0x523   : > { %v3133_v14 = vsel %vm1104_vm3, %v3129_v59, %v3131_v39  ;;  %v1936_v1 = vpop.f32.mrf.mxu1 }
 0x524   : > { %3543 = vmatmul.mubr.msk.bf16.vlgmr.msra.gmra.mxu0 %vm522_vm6, %v3624_v62  ;;  %3547 = vmatprep.subr.msk.bf16.mxu1 %vm526_vm5, %v3133_v14 }
 0x525   : > { %3158 = vmatpush1.bf16.msra.mxu1 %v3138_v50  ;;  %3282 = vmatprep.mubr.f32.mxu0 %v3635_v7  ;;  %v1938_v9 = vpop.f32.mrf.mxu1 }
 0x527   : > { %v1940_v5 = vpop.f32.mrf.mxu1 }
 0x528   : > { %3548 = vmatmul.mubr.msk.bf16.vlgmr.msra.gmra.mxu1 %vm522_vm6, %v3625_v17 }
 0x594   : > { %v4436_v0 = vpop.f32.mrf.mxu0 }
 0x596   : > { %v1879_v2 = vpop.f32.mrf.mxu0 }
 0x597   : > { %v1937_v59 = vadd.f32 %v1936_v1, %v1879_v2 }
 0x598   : > { %v1881_v6 = vpop.f32.mrf.mxu0 }
 0x599   : > { %v1939_v14 = vadd.f32 %v1938_v9, %v1881_v6 }
 0x59a   : > { %v1883_v10 = vpop.f32.mrf.mxu0 }
 0x5ac   : > { %v4440_v19 = vpop.f32.mrf.mxu0 }
 0x5ae   : > { %v2013_v12 = vpop.f32.mrf.mxu0 }
 0x5b0   : > { %v2015_v21 = vpop.f32.mrf.mxu0  ;;  %v4442_v22 = vpop.f32.mrf.mxu1 }
 0x5b2   : > { %v4444_v23 = vpop.f32.mrf.mxu0  ;;  %v4446_v7 = vpop.f32.mrf.mxu1 }
 0x5b4   : > { %v4448_v11 = vpop.f32.mrf.mxu1  ;;  %v4450_v8 = vpop.f32.mrf.mxu0 }
 0x5b6   : > { %v4452_v16 = vpop.f32.mrf.mxu1  ;;  %v4454_v45 = vpop.f32.mrf.mxu0 }
 0x5b8   : > { %v4456_v3 = vpop.f32.mrf.mxu0  ;;  %v4458_v53 = vpop.f32.mrf.mxu1 }
 0x5ba   : > { %v4460_v26 = vpop.f32.mrf.mxu0  ;;  %v4462_v20 = vpop.f32.mrf.mxu1 }
 0x5bc   : > { %v4464_v27 = vpop.f32.mrf.mxu1  ;;  %v4466_v25 = vpop.f32.mrf.mxu0 }
 0x5bd   : > { %4547 = vst [vmem:[#allocation2_spill] sm:$0xff] %v4466_v25 }
 0x5be   : > { %v4468_v28 = vpop.f32.mrf.mxu1  ;;  %v4470_v29 = vpop.f32.mrf.mxu0 }
 0x5c0   : > { %v4472_v30 = vpop.f32.mrf.mxu0  ;;  %v4474_v31 = vpop.f32.mrf.mxu1 }
 0x5c1   : > { %4548 = vst [vmem:[#allocation3_spill] sm:$0xff] %v4474_v31 }
 0x5c2   : > { %v4476_v34 = vpop.f32.mrf.mxu0  ;;  %v4478_v35 = vpop.f32.mrf.mxu1 }
 0x5c3   : > { %4549 = vst [vmem:[#allocation4_spill] sm:$0xff] %v4476_v34  ;;  %4550 = vst [vmem:[#allocation5_spill] sm:$0xff] %v4478_v35 }
 0x5c4   : > { %v4480_v13 = vpop.f32.mrf.mxu1  ;;  %v4482_v36 = vpop.f32.mrf.mxu0 }
 0x5c5   : > { %4551 = vst [vmem:[#allocation6_spill] sm:$0xff] %v4480_v13  ;;  %4552 = vst [vmem:[#allocation7_spill] sm:$0xff] %v4482_v36  ;;  %v1941_v36 = vadd.f32 %v1940_v5, %v1883_v10  ;;  %v2022_v13 = vadd.f32 %v2015_v21, %v1939_v14 }
 0x5c6   : > { %v4484_v46 = vpop.f32.mrf.mxu1  ;;  %v4486_v37 = vpop.f32.mrf.mxu0 }
 0x5c7   : > { %4553 = vst [vmem:[#allocation8_spill] sm:$0xff] %v4484_v46  ;;  %4554 = vst [vmem:[#allocation9_spill] sm:$0xff] %v4486_v37  ;;  %v2023_v1 = vadd.f32 %v4444_v23, %v1941_v36 }
 0x5c8   : > { %v4488_v24 = vpop.f32.mrf.mxu0  ;;  %v2575_v52 = vpop.f32.mrf.mxu1 }
 0x5c9   : > { %4555 = vst [vmem:[#allocation10_spill] sm:$0xff] %v4488_v24  ;;  %v2021_v24 = vadd.f32 %v2013_v12, %v1937_v59  ;;  %v2104_v21 = vadd.f32 %v4452_v16, %v2023_v1 }
 0x5ca   : > { %v4490_v41 = vpop.f32.mrf.mxu0  ;;  %v2577_v43 = vpop.f32.mrf.mxu1 }
 0x5cb   : > { %4556 = vst [vmem:[#allocation11_spill] sm:$0xff] %v4490_v41  ;;  %v1935_v41 = vadd.f32 %v4438_v18, %v4436_v0  ;;  %v2102_v6 = vadd.f32 %v4446_v7, %v2021_v24  ;;  %v2103_v0 = vadd.f32 %v4448_v11, %v2022_v13  ;;  %v2176_v11 = vadd.f32 %v4460_v26, %v2104_v21  ;;  %v3204_v21 = vpop.permute.xlu0 %3203 }
 0x5cc   : > { %v2579_v40 = vpop.f32.mrf.mxu1  ;;  %v2632_v44 = vpop.f32.mrf.mxu0 }
 0x5cd   : > { %v2633_v62 = vadd.f32 %v2632_v44, %v2575_v52  ;;  %v2020_v2 = vadd.f32 %v4440_v19, %v1935_v41  ;;  %v2175_v23 = vadd.f32 %v4456_v3, %v2103_v0  ;;  %v2257_v3 = vadd.f32 %v4468_v28, %v2176_v11  ;;  %v4560_v28 = vld [vmem:[#allocation6_spill] sm:$0xff] }
 0x5ce   : > { %v2581_v33 = vpop.f32.mrf.mxu1  ;;  %v2634_v49 = vpop.f32.mrf.mxu0 }
 0x5cf   : > { %v2635_v61 = vadd.f32 %v2634_v49, %v2577_v43  ;;  %v2101_v12 = vadd.f32 %v4442_v22, %v2020_v2  ;;  %v2256_v16 = vadd.f32 %v4464_v27, %v2175_v23  ;;  %v4558_v27 = vld [vmem:[#allocation4_spill] sm:$0xff] }
 0x5d0   : > { %v2636_v51 = vpop.f32.mrf.mxu0  ;;  %v2709_v55 = vpop.f32.mrf.mxu1 }
 0x5d1   : > { %v2637_v50 = vadd.f32 %v2636_v51, %v2579_v40  ;;  %v2718_v37 = vadd.f32 %v2709_v55, %v2633_v62  ;;  %v2174_v40 = vadd.f32 %v4454_v45, %v2102_v6  ;;  %v2173_v24 = vadd.f32 %v4450_v8, %v2101_v12  ;;  %v4565_v6 = vld [vmem:[#allocation7_spill] sm:$0xff] }
 0x5d2   : > { %v2638_v38 = vpop.f32.mrf.mxu0  ;;  %v2711_v32 = vpop.f32.mrf.mxu1  ;;  %v2337_v26 = vadd.f32 %v4472_v30, %v2256_v16  ;;  %v4562_v30 = vld [vmem:[#allocation8_spill] sm:$0xff]  ;;  %v3293_v16 = vld [vmem:[%s4544_s10] sm:$0xff] }
 0x5d3   : > { %v2719_v17 = vadd.f32 %v2711_v32, %v2635_v61  ;;  %v2639_v35 = vadd.f32 %v2638_v38, %v2581_v33  ;;  %v2254_v49 = vadd.f32 %v4458_v53, %v2173_v24 }
 0x5d4   : > { %v2713_v15 = vpop.f32.mrf.mxu1  ;;  %v2790_v56 = vpop.f32.mrf.mxu0 }
 0x5d5   : > { %v2720_v34 = vadd.f32 %v2713_v15, %v2637_v50  ;;  %v2799_v9 = vadd.f32 %v2790_v56, %v2718_v37  ;;  %v4557_v56 = vld [vmem:[#allocation2_spill] sm:$0xff] }
 0x5d6   : > { %v2715_v42 = vpop.f32.mrf.mxu1  ;;  %v2792_v57 = vpop.f32.mrf.mxu0  ;;  %v4564_v50 = vld [vmem:[#allocation10_spill] sm:$0xff] }
 0x5d7   : > { %v2800_v25 = vadd.f32 %v2792_v57, %v2719_v17  ;;  %v2721_v18 = vadd.f32 %v2715_v42, %v2639_v35  ;;  %v2335_v42 = vadd.f32 %v4557_v56, %v2254_v49  ;;  %v2338_v57 = vadd.f32 %v4558_v27, %v2257_v3 }
 0x5d8   : > { %v2794_v48 = vpop.f32.mrf.mxu0  ;;  %v2862_v47 = vpop.f32.mrf.mxu1 }
 0x5d9   : > { %v2801_v10 = vadd.f32 %v2794_v48, %v2720_v34  ;;  %v2871_v44 = vadd.f32 %v2862_v47, %v2799_v9  ;;  %v2410_v59 = vadd.f32 %v4562_v30, %v2338_v57 }
 0x5da   : > { %v2796_v58 = vpop.f32.mrf.mxu0  ;;  %v2864_v54 = vpop.f32.mrf.mxu1 }
 0x5db   : > { %v2872_v5 = vadd.f32 %v2864_v54, %v2800_v25  ;;  %v2802_v7 = vadd.f32 %v2796_v58, %v2721_v18  ;;  %v2255_v25 = vadd.f32 %v4462_v20, %v2174_v40  ;;  %v2409_v54 = vadd.f32 %v4560_v28, %v2337_v26 }
 0x5dc   : > { %v2866_v60 = vpop.f32.mrf.mxu1  ;;  %v2943_v4 = vpop.f32.mrf.mxu0 }
 0x5dd   : > { %v2873_v36 = vadd.f32 %v2866_v60, %v2801_v10  ;;  %v2952_v34 = vadd.f32 %v2943_v4, %v2871_v44  ;;  %v2336_v51 = vadd.f32 %v4470_v29, %v2255_v25  ;;  %v4561_v4 = vld [vmem:[#allocation3_spill] sm:$0xff]  ;;  %v2490_v17 = vadd.f32 %v4564_v50, %v2409_v54  ;;  %v3199_v44 = vpop.permute.xlu1 %3198  ;;  %v3214_v25 = vld [vmem:[%s4543_s9] sm:$0xff] }
 0x5de   : > { %v2868_v63 = vpop.f32.mrf.mxu1  ;;  %v2945_v39 = vpop.f32.mrf.mxu0  ;;  %v2407_v61 = vadd.f32 %v4561_v4, %v2335_v42 }
 0x5df   : > { %v2953_v37 = vadd.f32 %v2945_v39, %v2872_v5  ;;  %v2874_v45 = vadd.f32 %v2868_v63, %v2802_v7  ;;  %v4563_v39 = vld [vmem:[#allocation9_spill] sm:$0xff] }
 0x5e0   : > { %v2947_v46 = vpop.f32.mrf.mxu0  ;;  %v3024_v31 = vpop.f32.mrf.mxu1  ;;  %v2488_v9 = vadd.f32 %v4565_v6, %v2407_v61 }
 0x5e1   : > { %v2954_v13 = vadd.f32 %v2947_v46, %v2873_v36  ;;  %v3033_v55 = vadd.f32 %v3024_v31, %v2952_v34  ;;  %v4559_v46 = vld [vmem:[#allocation5_spill] sm:$0xff] }
 0x5e2   : > { %v2949_v52 = vpop.f32.mrf.mxu0  ;;  %v3026_v43 = vpop.f32.mrf.mxu1  ;;  %v2408_v48 = vadd.f32 %v4559_v46, %v2336_v51 }
 0x5e3   : > { %v3034_v33 = vadd.f32 %v3026_v43, %v2953_v37  ;;  %v2955_v20 = vadd.f32 %v2949_v52, %v2874_v45  ;;  %v4566_v43 = vld [vmem:[#allocation11_spill] sm:$0xff] }
 0x5e4   : > { %v3028_v19 = vpop.f32.mrf.mxu1  ;;  %v3096_v41 = vpop.f32.mrf.mxu0  ;;  %v2489_v14 = vadd.f32 %v4563_v39, %v2408_v48  ;;  %v2491_v0 = vadd.f32 %v4566_v43, %v2410_v59 }
 0x5e5   : > { %v3035_v32 = vadd.f32 %v3028_v19, %v2954_v13  ;;  %v3105_v47 = vadd.f32 %v3096_v41, %v3033_v55 }
 0x5e6   : > { %v3030_v22 = vpop.f32.mrf.mxu1  ;;  %v3098_v35 = vpop.f32.mrf.mxu0 }
 0x5e7   : > { %v3106_v15 = vadd.f32 %v3098_v35, %v3034_v33  ;;  %v3036_v29 = vadd.f32 %v3030_v22, %v2955_v20 }
 0x5e8   : > { %v3100_v8 = vpop.f32.mrf.mxu0  ;;  %v3177_v38 = vpop.f32.mrf.mxu1 }
 0x5e9   : > { %v3107_v31 = vadd.f32 %v3100_v8, %v3035_v32  ;;  %v3186_v62 = vadd.f32 %v3177_v38, %v3105_v47 }
 0x5ea   : > { %v3102_v53 = vpop.f32.mrf.mxu0  ;;  %v3179_v58 = vpop.f32.mrf.mxu1 }
 0x5eb   : > { %v3187_v60 = vadd.f32 %v3179_v58, %v3106_v15  ;;  %v3108_v2 = vadd.f32 %v3102_v53, %v3036_v29  ;;  %v3190_v12 = vadd.f32 %v3186_v62, %v2488_v9 }
 0x5ec   : > { %v3181_v63 = vpop.f32.mrf.mxu1 }
 0x5ed   : > { %v3188_v1 = vadd.f32 %v3181_v63, %v3107_v31  ;;  %v3191_v18 = vadd.f32 %v3187_v60, %v2489_v14  ;;  %v3206_v7 = vadd.f32 %v3199_v44, %v3190_v12 }
 0x5ee   : > { %v3183_v52 = vpop.f32.mrf.mxu1 }
 0x5ef   : > { %v3192_v10 = vadd.f32 %v3188_v1, %v2490_v17  ;;  %v3189_v5 = vadd.f32 %v3183_v52, %v3108_v2  ;;  %v3207_v23 = vadd.f32 %v3199_v44, %v3191_v18  ;;  %v3210_v11 = vmax.f32 %v3206_v7, 0.0 }
 0x5f1   : > { %v3193_v40 = vadd.f32 %v3189_v5, %v2491_v0  ;;  %v3208_v19 = vadd.f32 %v3204_v21, %v3192_v10  ;;  %v3211_v24 = vmax.f32 %v3207_v23, 0.0 }
 0x5f3   : > { %v3209_v41 = vadd.f32 %v3204_v21, %v3193_v40  ;;  %v3212_v37 = vmax.f32 %v3208_v19, 0.0 }
 0x5f5   : > { %v3213_v36 = vmax.f32 %v3209_v41, 0.0 }
 0x5f7   : > { %3246 = vmatprep.subr.mxu0 %v3213_v36 }
 0x5f8   : > { %3247 = vmatpush1.msra.mxu0 %v3212_v37 }
 0x5f9   : > { %3248 = vmatprep.subr.mxu0 %v3211_v24 }
 0x5fa   : > { %3249 = vmatpush1.msra.mxu0 %v3210_v11 }
 0x5fb   : > { %3549 = vmatmul.mubr.msk.f32.vlgmr.msra.gmra.mxu0 %vm713_vm8, %v3214_v25 }
 0x6bb   : > { %v3284_v34 = vpop.f32.mrf.mxu0 }
 0x6bd   : > { %v3286_v22 = vpop.f32.mrf.mxu0 }
 0x6be   : > { %v3289_v35 = vadd.f32 %v3286_v22, %v3284_v34 }
 0x6c0   : > { %3290 = vadd.xlane.f32.xlu0 %v3289_v35 }
 0x749   : > { %v3291_v45 = vpop.xlane.xlu0 %3290 }
 0x74a   : > { %v3292_v13 = vmul.f32 0.00390625, %v3291_v45 }
 0x74c   : > { %v3294_v33 = vadd.f32 %v3293_v16, %v3292_v13 }
 0x74e   : > { %3296 = vst.msk [vmem:[%s444_s28] sm:$0xff] %vm3295_vm4, %v3294_v33 }
 0x74f PF: > { %s23_s21 = sadd.s32 1, %s3632_s21  }
 0x750   : > { %p20_p4 = scmp.ge.s32.totalorder %s23_s21, 4  }
 0x752   :  { %22 = sbr.rel (!%p20_p4) target bundleno = 1 (0x1), region = 141 }

</bundles_post_ra>
